<compile_context>
chip_gen: v6e
topology: v6e:2x2x1
jax: 0.10.0
libtpu: 0.0.40
codegen_flags: <defaults>
</compile_context>

<pallas_src>
import jax
import jax.numpy as jnp
from jax.experimental import pallas as pl
from jax.experimental.pallas import tpu as pltpu

NUM_LAYERS = 3
BN_EPS = 1e-5


def _grasp_header_kernel(x_ref, conv_w_ref, gamma_ref, beta_ref, pred_w_ref,
                         out_ref):
    # x_ref / out_ref: (4, H, W) f32 in VMEM (channel planes).
    # conv_w_ref: (NUM_LAYERS*4*4,) f32 SMEM, layer-major then out-ch then in-ch.
    # gamma_ref / beta_ref: (NUM_LAYERS*4,) f32 SMEM.
    # pred_w_ref: (4,) f32 SMEM -> [point, width, cos, sin] 1x1-conv scalars.
    _, H, W = x_ref.shape
    inv_n = 1.0 / float(H * W)

    h = [x_ref[c] for c in range(4)]                  # four (H, W) planes

    for i in range(NUM_LAYERS):                       # static unroll
        base = i * 16

        # Conv2d(4,4,1): per-pixel 4x4 contraction as scalar-broadcast FMAs
        # on the VPU (no MXU, no padding; bias dropped -- cancels under BN).
        y = []
        for c in range(4):
            acc = conv_w_ref[base + 4 * c] * h[0]
            for j in range(1, 4):
                acc = acc + conv_w_ref[base + 4 * c + j] * h[j]
            y.append(acc)

        # BatchNorm2d (training-mode batch stats, biased var) + ReLU, fused
        # into a single per-channel scale/shift applied in one pass.
        new_h = []
        for c in range(4):
            yc = y[c]
            s = jnp.sum(jnp.sum(yc, axis=1, keepdims=True),
                        axis=0, keepdims=True)                      # (1, 1)
            ss = jnp.sum(jnp.sum(yc * yc, axis=1, keepdims=True),
                         axis=0, keepdims=True)                     # (1, 1)
            mean = s * inv_n
            var = ss * inv_n - mean * mean                          # biased var
            scale = gamma_ref[4 * i + c] * jax.lax.rsqrt(var + BN_EPS)
            shift = beta_ref[4 * i + c] - mean * scale
            new_h.append(jnp.maximum(yc * scale + shift, 0.0))
        h = new_h

    # Per-channel 1x1 predictors (scalar multiplies); ReLU on pos/width only.
    out_ref[0] = jnp.maximum(h[0] * pred_w_ref[0], 0.0)   # relu(point(x[:,0]))
    out_ref[1] = jnp.maximum(h[1] * pred_w_ref[1], 0.0)   # relu(width(x[:,1]))
    out_ref[2] = h[2] * pred_w_ref[2]                     # cos(x[:,2])
    out_ref[3] = h[3] * pred_w_ref[3]                     # sin(x[:,3])


def conv_grasp_header(x, params):
    """x: (1, 4, H, W) float32 NCHW. Returns (pos, cos, sin, width), each (1, H, W)."""
    conv_w, gamma, beta, pred_w = params
    B, C, H, W = x.shape
    assert B == 1 and C == 4, "torch forward semantics require B == 1, C == 4"

    x3 = x.reshape(4, H, W).astype(jnp.float32)

    # Whole image stays VMEM-resident (no grid).  Size the scoped VMEM limit
    # to the actual working set with headroom; refuse images that would need
    # the spatial-grid / two-pass-BN variant.
    plane_set_bytes = 4 * H * W * 4
    assert 10 * plane_set_bytes <= 48 * 2**20, (
        "image too large for the single-block kernel; add a spatial grid")
    vmem_limit = int(min(100 * 2**20, max(4 * 2**20, 10 * plane_set_bytes)))

    vmem = pl.BlockSpec(memory_space=pltpu.MemorySpace.VMEM)
    smem = pl.BlockSpec(memory_space=pltpu.MemorySpace.SMEM)

    out = pl.pallas_call(
        _grasp_header_kernel,
        out_shape=jax.ShapeDtypeStruct((4, H, W), jnp.float32),
        in_specs=[vmem, smem, smem, smem, smem],
        out_specs=vmem,
        compiler_params=pltpu.CompilerParams(vmem_limit_bytes=vmem_limit),
    )(x3,
      conv_w.reshape(-1).astype(jnp.float32),
      gamma.reshape(-1).astype(jnp.float32),
      beta.reshape(-1).astype(jnp.float32),
      pred_w.astype(jnp.float32))

    pos, width, cos, sin = out[0:1], out[1:2], out[2:3], out[3:4]
    return pos, cos, sin, width                        # torch return order


def init_params(key):
    """Deterministic synthetic init mirroring the torch module's __init__."""
    k_conv, k_pred = jax.random.split(key, 2)
    # Conv2d(4,4,1): kaiming_normal_ fan_in=4, gain=sqrt(2) -> std = sqrt(2/4).
    conv_w = jax.random.normal(k_conv, (NUM_LAYERS, 4, 4), jnp.float32) * jnp.sqrt(2.0 / 4.0)
    # Conv bias omitted: torch inits it to 0 and it cancels under training-mode BN.
    gamma = jnp.ones((NUM_LAYERS, 4), jnp.float32)     # BN weight init 1
    beta = jnp.zeros((NUM_LAYERS, 4), jnp.float32)     # BN bias init 0
    # Conv2d(1,1,1,bias=False): fan_in=1 -> std = sqrt(2).
    # Order: [point, width, cos, sin]; the fusion conv is unused in forward -> omitted.
    pred_w = jax.random.normal(k_pred, (4,), jnp.float32) * jnp.sqrt(2.0)
    return conv_w, gamma, beta, pred_w


def _reference(x, params):
    """Pure-jnp reference of the torch forward (training-mode BN, B == 1)."""
    conv_w, gamma, beta, pred_w = params
    _, _, H, W = x.shape
    h = x.reshape(4, H * W).astype(jnp.float32)
    for i in range(NUM_LAYERS):
        y = conv_w[i] @ h
        mean = jnp.mean(y, axis=1, keepdims=True)
        var = jnp.mean(jnp.square(y - mean), axis=1, keepdims=True)
        y = (y - mean) / jnp.sqrt(var + BN_EPS)
        y = y * gamma[i][:, None] + beta[i][:, None]
        h = jnp.maximum(y, 0.0)
    pos = jnp.maximum(h[0] * pred_w[0], 0.0).reshape(1, H, W)
    width = jnp.maximum(h[1] * pred_w[1], 0.0).reshape(1, H, W)
    cos = (h[2] * pred_w[2]).reshape(1, H, W)
    sin = (h[3] * pred_w[3]).reshape(1, H, W)
    return pos, cos, sin, width


if __name__ == "__main__":
    key = jax.random.PRNGKey(0)
    k_x, k_p = jax.random.split(key)
    # B=1 is required by the torch forward (unbatched Conv2d(1,1,1) on slices).
    x = jax.random.normal(k_x, (1, 4, 16, 16), jnp.float32)
    params = init_params(k_p)

    outs = conv_grasp_header(x, params)
    jax.block_until_ready(outs)
    pos, cos, sin, width = outs

    assert pos.shape == (1, 16, 16) and cos.shape == (1, 16, 16)
    assert sin.shape == (1, 16, 16) and width.shape == (1, 16, 16)

    refs = _reference(x, params)
    for got, want in zip(outs, refs):
        assert bool(jnp.allclose(got, want, rtol=2e-3, atol=2e-3)), (
            float(jnp.max(jnp.abs(got - want))))

    print("KERNEL_OK")
</pallas_src>

<mosaic_0001>
module attributes {stable_mosaic.version = 11 : i64} {
  func.func @_grasp_header_kernel(%arg0: memref<4x16x16xf32, #tpu.memory_space<vmem>>, %arg1: memref<48xf32, #tpu.memory_space<smem>>, %arg2: memref<12xf32, #tpu.memory_space<smem>>, %arg3: memref<12xf32, #tpu.memory_space<smem>>, %arg4: memref<4xf32, #tpu.memory_space<smem>>, %arg5: memref<4x16x16xf32, #tpu.memory_space<vmem>>) attributes {dimension_semantics = [], scalar_prefetch = 0 : i64, scratch_operands = 0 : i64, tpu.core_type = #tpu.core_type<tc>} {
    %c0 = arith.constant 0 : index
    %c0_0 = arith.constant 0 : index
    %c0_1 = arith.constant 0 : index
    %0 = vector.load %arg0[%c0, %c0_0, %c0_1] : memref<4x16x16xf32, #tpu.memory_space<vmem>>, vector<1x16x16xf32>
    %1 = vector.shape_cast %0 : vector<1x16x16xf32> to vector<16x16xf32>
    %c1 = arith.constant 1 : index
    %c0_2 = arith.constant 0 : index
    %c0_3 = arith.constant 0 : index
    %2 = vector.load %arg0[%c1, %c0_2, %c0_3] : memref<4x16x16xf32, #tpu.memory_space<vmem>>, vector<1x16x16xf32>
    %3 = vector.shape_cast %2 : vector<1x16x16xf32> to vector<16x16xf32>
    %c2 = arith.constant 2 : index
    %c0_4 = arith.constant 0 : index
    %c0_5 = arith.constant 0 : index
    %4 = vector.load %arg0[%c2, %c0_4, %c0_5] : memref<4x16x16xf32, #tpu.memory_space<vmem>>, vector<1x16x16xf32>
    %5 = vector.shape_cast %4 : vector<1x16x16xf32> to vector<16x16xf32>
    %c3 = arith.constant 3 : index
    %c0_6 = arith.constant 0 : index
    %c0_7 = arith.constant 0 : index
    %6 = vector.load %arg0[%c3, %c0_6, %c0_7] : memref<4x16x16xf32, #tpu.memory_space<vmem>>, vector<1x16x16xf32>
    %7 = vector.shape_cast %6 : vector<1x16x16xf32> to vector<16x16xf32>
    %c0_8 = arith.constant 0 : index
    %8 = memref.load %arg1[%c0_8] : memref<48xf32, #tpu.memory_space<smem>>
    %9 = vector.broadcast %8 : f32 to vector<16x16xf32>
    %10 = arith.mulf %9, %1 : vector<16x16xf32>
    %c1_9 = arith.constant 1 : index
    %11 = memref.load %arg1[%c1_9] : memref<48xf32, #tpu.memory_space<smem>>
    %12 = vector.broadcast %11 : f32 to vector<16x16xf32>
    %13 = arith.mulf %12, %3 : vector<16x16xf32>
    %14 = arith.addf %10, %13 : vector<16x16xf32>
    %c2_10 = arith.constant 2 : index
    %15 = memref.load %arg1[%c2_10] : memref<48xf32, #tpu.memory_space<smem>>
    %16 = vector.broadcast %15 : f32 to vector<16x16xf32>
    %17 = arith.mulf %16, %5 : vector<16x16xf32>
    %18 = arith.addf %14, %17 : vector<16x16xf32>
    %c3_11 = arith.constant 3 : index
    %19 = memref.load %arg1[%c3_11] : memref<48xf32, #tpu.memory_space<smem>>
    %20 = vector.broadcast %19 : f32 to vector<16x16xf32>
    %21 = arith.mulf %20, %7 : vector<16x16xf32>
    %22 = arith.addf %18, %21 : vector<16x16xf32>
    %c4 = arith.constant 4 : index
    %23 = memref.load %arg1[%c4] : memref<48xf32, #tpu.memory_space<smem>>
    %24 = vector.broadcast %23 : f32 to vector<16x16xf32>
    %25 = arith.mulf %24, %1 : vector<16x16xf32>
    %c5 = arith.constant 5 : index
    %26 = memref.load %arg1[%c5] : memref<48xf32, #tpu.memory_space<smem>>
    %27 = vector.broadcast %26 : f32 to vector<16x16xf32>
    %28 = arith.mulf %27, %3 : vector<16x16xf32>
    %29 = arith.addf %25, %28 : vector<16x16xf32>
    %c6 = arith.constant 6 : index
    %30 = memref.load %arg1[%c6] : memref<48xf32, #tpu.memory_space<smem>>
    %31 = vector.broadcast %30 : f32 to vector<16x16xf32>
    %32 = arith.mulf %31, %5 : vector<16x16xf32>
    %33 = arith.addf %29, %32 : vector<16x16xf32>
    %c7 = arith.constant 7 : index
    %34 = memref.load %arg1[%c7] : memref<48xf32, #tpu.memory_space<smem>>
    %35 = vector.broadcast %34 : f32 to vector<16x16xf32>
    %36 = arith.mulf %35, %7 : vector<16x16xf32>
    %37 = arith.addf %33, %36 : vector<16x16xf32>
    %c8 = arith.constant 8 : index
    %38 = memref.load %arg1[%c8] : memref<48xf32, #tpu.memory_space<smem>>
    %39 = vector.broadcast %38 : f32 to vector<16x16xf32>
    %40 = arith.mulf %39, %1 : vector<16x16xf32>
    %c9 = arith.constant 9 : index
    %41 = memref.load %arg1[%c9] : memref<48xf32, #tpu.memory_space<smem>>
    %42 = vector.broadcast %41 : f32 to vector<16x16xf32>
    %43 = arith.mulf %42, %3 : vector<16x16xf32>
    %44 = arith.addf %40, %43 : vector<16x16xf32>
    %c10 = arith.constant 10 : index
    %45 = memref.load %arg1[%c10] : memref<48xf32, #tpu.memory_space<smem>>
    %46 = vector.broadcast %45 : f32 to vector<16x16xf32>
    %47 = arith.mulf %46, %5 : vector<16x16xf32>
    %48 = arith.addf %44, %47 : vector<16x16xf32>
    %c11 = arith.constant 11 : index
    %49 = memref.load %arg1[%c11] : memref<48xf32, #tpu.memory_space<smem>>
    %50 = vector.broadcast %49 : f32 to vector<16x16xf32>
    %51 = arith.mulf %50, %7 : vector<16x16xf32>
    %52 = arith.addf %48, %51 : vector<16x16xf32>
    %c12 = arith.constant 12 : index
    %53 = memref.load %arg1[%c12] : memref<48xf32, #tpu.memory_space<smem>>
    %54 = vector.broadcast %53 : f32 to vector<16x16xf32>
    %55 = arith.mulf %54, %1 : vector<16x16xf32>
    %c13 = arith.constant 13 : index
    %56 = memref.load %arg1[%c13] : memref<48xf32, #tpu.memory_space<smem>>
    %57 = vector.broadcast %56 : f32 to vector<16x16xf32>
    %58 = arith.mulf %57, %3 : vector<16x16xf32>
    %59 = arith.addf %55, %58 : vector<16x16xf32>
    %c14 = arith.constant 14 : index
    %60 = memref.load %arg1[%c14] : memref<48xf32, #tpu.memory_space<smem>>
    %61 = vector.broadcast %60 : f32 to vector<16x16xf32>
    %62 = arith.mulf %61, %5 : vector<16x16xf32>
    %63 = arith.addf %59, %62 : vector<16x16xf32>
    %c15 = arith.constant 15 : index
    %64 = memref.load %arg1[%c15] : memref<48xf32, #tpu.memory_space<smem>>
    %65 = vector.broadcast %64 : f32 to vector<16x16xf32>
    %66 = arith.mulf %65, %7 : vector<16x16xf32>
    %67 = arith.addf %63, %66 : vector<16x16xf32>
    %cst = arith.constant dense<0.000000e+00> : vector<16xf32>
    %68 = vector.multi_reduction <add>, %22, %cst [1] : vector<16x16xf32> to vector<16xf32>
    %69 = vector.shape_cast %68 : vector<16xf32> to vector<16x1xf32>
    %cst_12 = arith.constant dense<0.000000e+00> : vector<1xf32>
    %70 = vector.multi_reduction <add>, %69, %cst_12 [0] : vector<16x1xf32> to vector<1xf32>
    %71 = vector.shape_cast %70 : vector<1xf32> to vector<1x1xf32>
    %72 = arith.mulf %22, %22 : vector<16x16xf32>
    %cst_13 = arith.constant dense<0.000000e+00> : vector<16xf32>
    %73 = vector.multi_reduction <add>, %72, %cst_13 [1] : vector<16x16xf32> to vector<16xf32>
    %74 = vector.shape_cast %73 : vector<16xf32> to vector<16x1xf32>
    %cst_14 = arith.constant dense<0.000000e+00> : vector<1xf32>
    %75 = vector.multi_reduction <add>, %74, %cst_14 [0] : vector<16x1xf32> to vector<1xf32>
    %76 = vector.shape_cast %75 : vector<1xf32> to vector<1x1xf32>
    %cst_15 = arith.constant 3.906250e-03 : f32
    %77 = vector.broadcast %cst_15 : f32 to vector<1x1xf32>
    %78 = arith.mulf %71, %77 : vector<1x1xf32>
    %cst_16 = arith.constant 3.906250e-03 : f32
    %79 = vector.broadcast %cst_16 : f32 to vector<1x1xf32>
    %80 = arith.mulf %76, %79 : vector<1x1xf32>
    %81 = arith.mulf %78, %78 : vector<1x1xf32>
    %82 = arith.subf %80, %81 : vector<1x1xf32>
    %c0_17 = arith.constant 0 : index
    %83 = memref.load %arg2[%c0_17] : memref<12xf32, #tpu.memory_space<smem>>
    %cst_18 = arith.constant 9.99999974E-6 : f32
    %84 = vector.broadcast %cst_18 : f32 to vector<1x1xf32>
    %85 = arith.addf %82, %84 : vector<1x1xf32>
    %86 = math.rsqrt %85 : vector<1x1xf32>
    %87 = vector.broadcast %83 : f32 to vector<1x1xf32>
    %88 = arith.mulf %87, %86 : vector<1x1xf32>
    %c0_19 = arith.constant 0 : index
    %89 = memref.load %arg3[%c0_19] : memref<12xf32, #tpu.memory_space<smem>>
    %90 = arith.mulf %78, %88 : vector<1x1xf32>
    %91 = vector.broadcast %89 : f32 to vector<1x1xf32>
    %92 = arith.subf %91, %90 : vector<1x1xf32>
    %93 = vector.broadcast %88 : vector<1x1xf32> to vector<16x16xf32>
    %94 = arith.mulf %22, %93 : vector<16x16xf32>
    %95 = vector.broadcast %92 : vector<1x1xf32> to vector<16x16xf32>
    %96 = arith.addf %94, %95 : vector<16x16xf32>
    %cst_20 = arith.constant 0.000000e+00 : f32
    %97 = vector.broadcast %cst_20 : f32 to vector<16x16xf32>
    %98 = arith.maximumf %96, %97 : vector<16x16xf32>
    %cst_21 = arith.constant dense<0.000000e+00> : vector<16xf32>
    %99 = vector.multi_reduction <add>, %37, %cst_21 [1] : vector<16x16xf32> to vector<16xf32>
    %100 = vector.shape_cast %99 : vector<16xf32> to vector<16x1xf32>
    %cst_22 = arith.constant dense<0.000000e+00> : vector<1xf32>
    %101 = vector.multi_reduction <add>, %100, %cst_22 [0] : vector<16x1xf32> to vector<1xf32>
    %102 = vector.shape_cast %101 : vector<1xf32> to vector<1x1xf32>
    %103 = arith.mulf %37, %37 : vector<16x16xf32>
    %cst_23 = arith.constant dense<0.000000e+00> : vector<16xf32>
    %104 = vector.multi_reduction <add>, %103, %cst_23 [1] : vector<16x16xf32> to vector<16xf32>
    %105 = vector.shape_cast %104 : vector<16xf32> to vector<16x1xf32>
    %cst_24 = arith.constant dense<0.000000e+00> : vector<1xf32>
    %106 = vector.multi_reduction <add>, %105, %cst_24 [0] : vector<16x1xf32> to vector<1xf32>
    %107 = vector.shape_cast %106 : vector<1xf32> to vector<1x1xf32>
    %cst_25 = arith.constant 3.906250e-03 : f32
    %108 = vector.broadcast %cst_25 : f32 to vector<1x1xf32>
    %109 = arith.mulf %102, %108 : vector<1x1xf32>
    %cst_26 = arith.constant 3.906250e-03 : f32
    %110 = vector.broadcast %cst_26 : f32 to vector<1x1xf32>
    %111 = arith.mulf %107, %110 : vector<1x1xf32>
    %112 = arith.mulf %109, %109 : vector<1x1xf32>
    %113 = arith.subf %111, %112 : vector<1x1xf32>
    %c1_27 = arith.constant 1 : index
    %114 = memref.load %arg2[%c1_27] : memref<12xf32, #tpu.memory_space<smem>>
    %cst_28 = arith.constant 9.99999974E-6 : f32
    %115 = vector.broadcast %cst_28 : f32 to vector<1x1xf32>
    %116 = arith.addf %113, %115 : vector<1x1xf32>
    %117 = math.rsqrt %116 : vector<1x1xf32>
    %118 = vector.broadcast %114 : f32 to vector<1x1xf32>
    %119 = arith.mulf %118, %117 : vector<1x1xf32>
    %c1_29 = arith.constant 1 : index
    %120 = memref.load %arg3[%c1_29] : memref<12xf32, #tpu.memory_space<smem>>
    %121 = arith.mulf %109, %119 : vector<1x1xf32>
    %122 = vector.broadcast %120 : f32 to vector<1x1xf32>
    %123 = arith.subf %122, %121 : vector<1x1xf32>
    %124 = vector.broadcast %119 : vector<1x1xf32> to vector<16x16xf32>
    %125 = arith.mulf %37, %124 : vector<16x16xf32>
    %126 = vector.broadcast %123 : vector<1x1xf32> to vector<16x16xf32>
    %127 = arith.addf %125, %126 : vector<16x16xf32>
    %cst_30 = arith.constant 0.000000e+00 : f32
    %128 = vector.broadcast %cst_30 : f32 to vector<16x16xf32>
    %129 = arith.maximumf %127, %128 : vector<16x16xf32>
    %cst_31 = arith.constant dense<0.000000e+00> : vector<16xf32>
    %130 = vector.multi_reduction <add>, %52, %cst_31 [1] : vector<16x16xf32> to vector<16xf32>
    %131 = vector.shape_cast %130 : vector<16xf32> to vector<16x1xf32>
    %cst_32 = arith.constant dense<0.000000e+00> : vector<1xf32>
    %132 = vector.multi_reduction <add>, %131, %cst_32 [0] : vector<16x1xf32> to vector<1xf32>
    %133 = vector.shape_cast %132 : vector<1xf32> to vector<1x1xf32>
    %134 = arith.mulf %52, %52 : vector<16x16xf32>
    %cst_33 = arith.constant dense<0.000000e+00> : vector<16xf32>
    %135 = vector.multi_reduction <add>, %134, %cst_33 [1] : vector<16x16xf32> to vector<16xf32>
    %136 = vector.shape_cast %135 : vector<16xf32> to vector<16x1xf32>
    %cst_34 = arith.constant dense<0.000000e+00> : vector<1xf32>
    %137 = vector.multi_reduction <add>, %136, %cst_34 [0] : vector<16x1xf32> to vector<1xf32>
    %138 = vector.shape_cast %137 : vector<1xf32> to vector<1x1xf32>
    %cst_35 = arith.constant 3.906250e-03 : f32
    %139 = vector.broadcast %cst_35 : f32 to vector<1x1xf32>
    %140 = arith.mulf %133, %139 : vector<1x1xf32>
    %cst_36 = arith.constant 3.906250e-03 : f32
    %141 = vector.broadcast %cst_36 : f32 to vector<1x1xf32>
    %142 = arith.mulf %138, %141 : vector<1x1xf32>
    %143 = arith.mulf %140, %140 : vector<1x1xf32>
    %144 = arith.subf %142, %143 : vector<1x1xf32>
    %c2_37 = arith.constant 2 : index
    %145 = memref.load %arg2[%c2_37] : memref<12xf32, #tpu.memory_space<smem>>
    %cst_38 = arith.constant 9.99999974E-6 : f32
    %146 = vector.broadcast %cst_38 : f32 to vector<1x1xf32>
    %147 = arith.addf %144, %146 : vector<1x1xf32>
    %148 = math.rsqrt %147 : vector<1x1xf32>
    %149 = vector.broadcast %145 : f32 to vector<1x1xf32>
    %150 = arith.mulf %149, %148 : vector<1x1xf32>
    %c2_39 = arith.constant 2 : index
    %151 = memref.load %arg3[%c2_39] : memref<12xf32, #tpu.memory_space<smem>>
    %152 = arith.mulf %140, %150 : vector<1x1xf32>
    %153 = vector.broadcast %151 : f32 to vector<1x1xf32>
    %154 = arith.subf %153, %152 : vector<1x1xf32>
    %155 = vector.broadcast %150 : vector<1x1xf32> to vector<16x16xf32>
    %156 = arith.mulf %52, %155 : vector<16x16xf32>
    %157 = vector.broadcast %154 : vector<1x1xf32> to vector<16x16xf32>
    %158 = arith.addf %156, %157 : vector<16x16xf32>
    %cst_40 = arith.constant 0.000000e+00 : f32
    %159 = vector.broadcast %cst_40 : f32 to vector<16x16xf32>
    %160 = arith.maximumf %158, %159 : vector<16x16xf32>
    %cst_41 = arith.constant dense<0.000000e+00> : vector<16xf32>
    %161 = vector.multi_reduction <add>, %67, %cst_41 [1] : vector<16x16xf32> to vector<16xf32>
    %162 = vector.shape_cast %161 : vector<16xf32> to vector<16x1xf32>
    %cst_42 = arith.constant dense<0.000000e+00> : vector<1xf32>
    %163 = vector.multi_reduction <add>, %162, %cst_42 [0] : vector<16x1xf32> to vector<1xf32>
    %164 = vector.shape_cast %163 : vector<1xf32> to vector<1x1xf32>
    %165 = arith.mulf %67, %67 : vector<16x16xf32>
    %cst_43 = arith.constant dense<0.000000e+00> : vector<16xf32>
    %166 = vector.multi_reduction <add>, %165, %cst_43 [1] : vector<16x16xf32> to vector<16xf32>
    %167 = vector.shape_cast %166 : vector<16xf32> to vector<16x1xf32>
    %cst_44 = arith.constant dense<0.000000e+00> : vector<1xf32>
    %168 = vector.multi_reduction <add>, %167, %cst_44 [0] : vector<16x1xf32> to vector<1xf32>
    %169 = vector.shape_cast %168 : vector<1xf32> to vector<1x1xf32>
    %cst_45 = arith.constant 3.906250e-03 : f32
    %170 = vector.broadcast %cst_45 : f32 to vector<1x1xf32>
    %171 = arith.mulf %164, %170 : vector<1x1xf32>
    %cst_46 = arith.constant 3.906250e-03 : f32
    %172 = vector.broadcast %cst_46 : f32 to vector<1x1xf32>
    %173 = arith.mulf %169, %172 : vector<1x1xf32>
    %174 = arith.mulf %171, %171 : vector<1x1xf32>
    %175 = arith.subf %173, %174 : vector<1x1xf32>
    %c3_47 = arith.constant 3 : index
    %176 = memref.load %arg2[%c3_47] : memref<12xf32, #tpu.memory_space<smem>>
    %cst_48 = arith.constant 9.99999974E-6 : f32
    %177 = vector.broadcast %cst_48 : f32 to vector<1x1xf32>
    %178 = arith.addf %175, %177 : vector<1x1xf32>
    %179 = math.rsqrt %178 : vector<1x1xf32>
    %180 = vector.broadcast %176 : f32 to vector<1x1xf32>
    %181 = arith.mulf %180, %179 : vector<1x1xf32>
    %c3_49 = arith.constant 3 : index
    %182 = memref.load %arg3[%c3_49] : memref<12xf32, #tpu.memory_space<smem>>
    %183 = arith.mulf %171, %181 : vector<1x1xf32>
    %184 = vector.broadcast %182 : f32 to vector<1x1xf32>
    %185 = arith.subf %184, %183 : vector<1x1xf32>
    %186 = vector.broadcast %181 : vector<1x1xf32> to vector<16x16xf32>
    %187 = arith.mulf %67, %186 : vector<16x16xf32>
    %188 = vector.broadcast %185 : vector<1x1xf32> to vector<16x16xf32>
    %189 = arith.addf %187, %188 : vector<16x16xf32>
    %cst_50 = arith.constant 0.000000e+00 : f32
    %190 = vector.broadcast %cst_50 : f32 to vector<16x16xf32>
    %191 = arith.maximumf %189, %190 : vector<16x16xf32>
    %c16 = arith.constant 16 : index
    %192 = memref.load %arg1[%c16] : memref<48xf32, #tpu.memory_space<smem>>
    %193 = vector.broadcast %192 : f32 to vector<16x16xf32>
    %194 = arith.mulf %193, %98 : vector<16x16xf32>
    %c17 = arith.constant 17 : index
    %195 = memref.load %arg1[%c17] : memref<48xf32, #tpu.memory_space<smem>>
    %196 = vector.broadcast %195 : f32 to vector<16x16xf32>
    %197 = arith.mulf %196, %129 : vector<16x16xf32>
    %198 = arith.addf %194, %197 : vector<16x16xf32>
    %c18 = arith.constant 18 : index
    %199 = memref.load %arg1[%c18] : memref<48xf32, #tpu.memory_space<smem>>
    %200 = vector.broadcast %199 : f32 to vector<16x16xf32>
    %201 = arith.mulf %200, %160 : vector<16x16xf32>
    %202 = arith.addf %198, %201 : vector<16x16xf32>
    %c19 = arith.constant 19 : index
    %203 = memref.load %arg1[%c19] : memref<48xf32, #tpu.memory_space<smem>>
    %204 = vector.broadcast %203 : f32 to vector<16x16xf32>
    %205 = arith.mulf %204, %191 : vector<16x16xf32>
    %206 = arith.addf %202, %205 : vector<16x16xf32>
    %c20 = arith.constant 20 : index
    %207 = memref.load %arg1[%c20] : memref<48xf32, #tpu.memory_space<smem>>
    %208 = vector.broadcast %207 : f32 to vector<16x16xf32>
    %209 = arith.mulf %208, %98 : vector<16x16xf32>
    %c21 = arith.constant 21 : index
    %210 = memref.load %arg1[%c21] : memref<48xf32, #tpu.memory_space<smem>>
    %211 = vector.broadcast %210 : f32 to vector<16x16xf32>
    %212 = arith.mulf %211, %129 : vector<16x16xf32>
    %213 = arith.addf %209, %212 : vector<16x16xf32>
    %c22 = arith.constant 22 : index
    %214 = memref.load %arg1[%c22] : memref<48xf32, #tpu.memory_space<smem>>
    %215 = vector.broadcast %214 : f32 to vector<16x16xf32>
    %216 = arith.mulf %215, %160 : vector<16x16xf32>
    %217 = arith.addf %213, %216 : vector<16x16xf32>
    %c23 = arith.constant 23 : index
    %218 = memref.load %arg1[%c23] : memref<48xf32, #tpu.memory_space<smem>>
    %219 = vector.broadcast %218 : f32 to vector<16x16xf32>
    %220 = arith.mulf %219, %191 : vector<16x16xf32>
    %221 = arith.addf %217, %220 : vector<16x16xf32>
    %c24 = arith.constant 24 : index
    %222 = memref.load %arg1[%c24] : memref<48xf32, #tpu.memory_space<smem>>
    %223 = vector.broadcast %222 : f32 to vector<16x16xf32>
    %224 = arith.mulf %223, %98 : vector<16x16xf32>
    %c25 = arith.constant 25 : index
    %225 = memref.load %arg1[%c25] : memref<48xf32, #tpu.memory_space<smem>>
    %226 = vector.broadcast %225 : f32 to vector<16x16xf32>
    %227 = arith.mulf %226, %129 : vector<16x16xf32>
    %228 = arith.addf %224, %227 : vector<16x16xf32>
    %c26 = arith.constant 26 : index
    %229 = memref.load %arg1[%c26] : memref<48xf32, #tpu.memory_space<smem>>
    %230 = vector.broadcast %229 : f32 to vector<16x16xf32>
    %231 = arith.mulf %230, %160 : vector<16x16xf32>
    %232 = arith.addf %228, %231 : vector<16x16xf32>
    %c27 = arith.constant 27 : index
    %233 = memref.load %arg1[%c27] : memref<48xf32, #tpu.memory_space<smem>>
    %234 = vector.broadcast %233 : f32 to vector<16x16xf32>
    %235 = arith.mulf %234, %191 : vector<16x16xf32>
    %236 = arith.addf %232, %235 : vector<16x16xf32>
    %c28 = arith.constant 28 : index
    %237 = memref.load %arg1[%c28] : memref<48xf32, #tpu.memory_space<smem>>
    %238 = vector.broadcast %237 : f32 to vector<16x16xf32>
    %239 = arith.mulf %238, %98 : vector<16x16xf32>
    %c29 = arith.constant 29 : index
    %240 = memref.load %arg1[%c29] : memref<48xf32, #tpu.memory_space<smem>>
    %241 = vector.broadcast %240 : f32 to vector<16x16xf32>
    %242 = arith.mulf %241, %129 : vector<16x16xf32>
    %243 = arith.addf %239, %242 : vector<16x16xf32>
    %c30 = arith.constant 30 : index
    %244 = memref.load %arg1[%c30] : memref<48xf32, #tpu.memory_space<smem>>
    %245 = vector.broadcast %244 : f32 to vector<16x16xf32>
    %246 = arith.mulf %245, %160 : vector<16x16xf32>
    %247 = arith.addf %243, %246 : vector<16x16xf32>
    %c31 = arith.constant 31 : index
    %248 = memref.load %arg1[%c31] : memref<48xf32, #tpu.memory_space<smem>>
    %249 = vector.broadcast %248 : f32 to vector<16x16xf32>
    %250 = arith.mulf %249, %191 : vector<16x16xf32>
    %251 = arith.addf %247, %250 : vector<16x16xf32>
    %cst_51 = arith.constant dense<0.000000e+00> : vector<16xf32>
    %252 = vector.multi_reduction <add>, %206, %cst_51 [1] : vector<16x16xf32> to vector<16xf32>
    %253 = vector.shape_cast %252 : vector<16xf32> to vector<16x1xf32>
    %cst_52 = arith.constant dense<0.000000e+00> : vector<1xf32>
    %254 = vector.multi_reduction <add>, %253, %cst_52 [0] : vector<16x1xf32> to vector<1xf32>
    %255 = vector.shape_cast %254 : vector<1xf32> to vector<1x1xf32>
    %256 = arith.mulf %206, %206 : vector<16x16xf32>
    %cst_53 = arith.constant dense<0.000000e+00> : vector<16xf32>
    %257 = vector.multi_reduction <add>, %256, %cst_53 [1] : vector<16x16xf32> to vector<16xf32>
    %258 = vector.shape_cast %257 : vector<16xf32> to vector<16x1xf32>
    %cst_54 = arith.constant dense<0.000000e+00> : vector<1xf32>
    %259 = vector.multi_reduction <add>, %258, %cst_54 [0] : vector<16x1xf32> to vector<1xf32>
    %260 = vector.shape_cast %259 : vector<1xf32> to vector<1x1xf32>
    %cst_55 = arith.constant 3.906250e-03 : f32
    %261 = vector.broadcast %cst_55 : f32 to vector<1x1xf32>
    %262 = arith.mulf %255, %261 : vector<1x1xf32>
    %cst_56 = arith.constant 3.906250e-03 : f32
    %263 = vector.broadcast %cst_56 : f32 to vector<1x1xf32>
    %264 = arith.mulf %260, %263 : vector<1x1xf32>
    %265 = arith.mulf %262, %262 : vector<1x1xf32>
    %266 = arith.subf %264, %265 : vector<1x1xf32>
    %c4_57 = arith.constant 4 : index
    %267 = memref.load %arg2[%c4_57] : memref<12xf32, #tpu.memory_space<smem>>
    %cst_58 = arith.constant 9.99999974E-6 : f32
    %268 = vector.broadcast %cst_58 : f32 to vector<1x1xf32>
    %269 = arith.addf %266, %268 : vector<1x1xf32>
    %270 = math.rsqrt %269 : vector<1x1xf32>
    %271 = vector.broadcast %267 : f32 to vector<1x1xf32>
    %272 = arith.mulf %271, %270 : vector<1x1xf32>
    %c4_59 = arith.constant 4 : index
    %273 = memref.load %arg3[%c4_59] : memref<12xf32, #tpu.memory_space<smem>>
    %274 = arith.mulf %262, %272 : vector<1x1xf32>
    %275 = vector.broadcast %273 : f32 to vector<1x1xf32>
    %276 = arith.subf %275, %274 : vector<1x1xf32>
    %277 = vector.broadcast %272 : vector<1x1xf32> to vector<16x16xf32>
    %278 = arith.mulf %206, %277 : vector<16x16xf32>
    %279 = vector.broadcast %276 : vector<1x1xf32> to vector<16x16xf32>
    %280 = arith.addf %278, %279 : vector<16x16xf32>
    %cst_60 = arith.constant 0.000000e+00 : f32
    %281 = vector.broadcast %cst_60 : f32 to vector<16x16xf32>
    %282 = arith.maximumf %280, %281 : vector<16x16xf32>
    %cst_61 = arith.constant dense<0.000000e+00> : vector<16xf32>
    %283 = vector.multi_reduction <add>, %221, %cst_61 [1] : vector<16x16xf32> to vector<16xf32>
    %284 = vector.shape_cast %283 : vector<16xf32> to vector<16x1xf32>
    %cst_62 = arith.constant dense<0.000000e+00> : vector<1xf32>
    %285 = vector.multi_reduction <add>, %284, %cst_62 [0] : vector<16x1xf32> to vector<1xf32>
    %286 = vector.shape_cast %285 : vector<1xf32> to vector<1x1xf32>
    %287 = arith.mulf %221, %221 : vector<16x16xf32>
    %cst_63 = arith.constant dense<0.000000e+00> : vector<16xf32>
    %288 = vector.multi_reduction <add>, %287, %cst_63 [1] : vector<16x16xf32> to vector<16xf32>
    %289 = vector.shape_cast %288 : vector<16xf32> to vector<16x1xf32>
    %cst_64 = arith.constant dense<0.000000e+00> : vector<1xf32>
    %290 = vector.multi_reduction <add>, %289, %cst_64 [0] : vector<16x1xf32> to vector<1xf32>
    %291 = vector.shape_cast %290 : vector<1xf32> to vector<1x1xf32>
    %cst_65 = arith.constant 3.906250e-03 : f32
    %292 = vector.broadcast %cst_65 : f32 to vector<1x1xf32>
    %293 = arith.mulf %286, %292 : vector<1x1xf32>
    %cst_66 = arith.constant 3.906250e-03 : f32
    %294 = vector.broadcast %cst_66 : f32 to vector<1x1xf32>
    %295 = arith.mulf %291, %294 : vector<1x1xf32>
    %296 = arith.mulf %293, %293 : vector<1x1xf32>
    %297 = arith.subf %295, %296 : vector<1x1xf32>
    %c5_67 = arith.constant 5 : index
    %298 = memref.load %arg2[%c5_67] : memref<12xf32, #tpu.memory_space<smem>>
    %cst_68 = arith.constant 9.99999974E-6 : f32
    %299 = vector.broadcast %cst_68 : f32 to vector<1x1xf32>
    %300 = arith.addf %297, %299 : vector<1x1xf32>
    %301 = math.rsqrt %300 : vector<1x1xf32>
    %302 = vector.broadcast %298 : f32 to vector<1x1xf32>
    %303 = arith.mulf %302, %301 : vector<1x1xf32>
    %c5_69 = arith.constant 5 : index
    %304 = memref.load %arg3[%c5_69] : memref<12xf32, #tpu.memory_space<smem>>
    %305 = arith.mulf %293, %303 : vector<1x1xf32>
    %306 = vector.broadcast %304 : f32 to vector<1x1xf32>
    %307 = arith.subf %306, %305 : vector<1x1xf32>
    %308 = vector.broadcast %303 : vector<1x1xf32> to vector<16x16xf32>
    %309 = arith.mulf %221, %308 : vector<16x16xf32>
    %310 = vector.broadcast %307 : vector<1x1xf32> to vector<16x16xf32>
    %311 = arith.addf %309, %310 : vector<16x16xf32>
    %cst_70 = arith.constant 0.000000e+00 : f32
    %312 = vector.broadcast %cst_70 : f32 to vector<16x16xf32>
    %313 = arith.maximumf %311, %312 : vector<16x16xf32>
    %cst_71 = arith.constant dense<0.000000e+00> : vector<16xf32>
    %314 = vector.multi_reduction <add>, %236, %cst_71 [1] : vector<16x16xf32> to vector<16xf32>
    %315 = vector.shape_cast %314 : vector<16xf32> to vector<16x1xf32>
    %cst_72 = arith.constant dense<0.000000e+00> : vector<1xf32>
    %316 = vector.multi_reduction <add>, %315, %cst_72 [0] : vector<16x1xf32> to vector<1xf32>
    %317 = vector.shape_cast %316 : vector<1xf32> to vector<1x1xf32>
    %318 = arith.mulf %236, %236 : vector<16x16xf32>
    %cst_73 = arith.constant dense<0.000000e+00> : vector<16xf32>
    %319 = vector.multi_reduction <add>, %318, %cst_73 [1] : vector<16x16xf32> to vector<16xf32>
    %320 = vector.shape_cast %319 : vector<16xf32> to vector<16x1xf32>
    %cst_74 = arith.constant dense<0.000000e+00> : vector<1xf32>
    %321 = vector.multi_reduction <add>, %320, %cst_74 [0] : vector<16x1xf32> to vector<1xf32>
    %322 = vector.shape_cast %321 : vector<1xf32> to vector<1x1xf32>
    %cst_75 = arith.constant 3.906250e-03 : f32
    %323 = vector.broadcast %cst_75 : f32 to vector<1x1xf32>
    %324 = arith.mulf %317, %323 : vector<1x1xf32>
    %cst_76 = arith.constant 3.906250e-03 : f32
    %325 = vector.broadcast %cst_76 : f32 to vector<1x1xf32>
    %326 = arith.mulf %322, %325 : vector<1x1xf32>
    %327 = arith.mulf %324, %324 : vector<1x1xf32>
    %328 = arith.subf %326, %327 : vector<1x1xf32>
    %c6_77 = arith.constant 6 : index
    %329 = memref.load %arg2[%c6_77] : memref<12xf32, #tpu.memory_space<smem>>
    %cst_78 = arith.constant 9.99999974E-6 : f32
    %330 = vector.broadcast %cst_78 : f32 to vector<1x1xf32>
    %331 = arith.addf %328, %330 : vector<1x1xf32>
    %332 = math.rsqrt %331 : vector<1x1xf32>
    %333 = vector.broadcast %329 : f32 to vector<1x1xf32>
    %334 = arith.mulf %333, %332 : vector<1x1xf32>
    %c6_79 = arith.constant 6 : index
    %335 = memref.load %arg3[%c6_79] : memref<12xf32, #tpu.memory_space<smem>>
    %336 = arith.mulf %324, %334 : vector<1x1xf32>
    %337 = vector.broadcast %335 : f32 to vector<1x1xf32>
    %338 = arith.subf %337, %336 : vector<1x1xf32>
    %339 = vector.broadcast %334 : vector<1x1xf32> to vector<16x16xf32>
    %340 = arith.mulf %236, %339 : vector<16x16xf32>
    %341 = vector.broadcast %338 : vector<1x1xf32> to vector<16x16xf32>
    %342 = arith.addf %340, %341 : vector<16x16xf32>
    %cst_80 = arith.constant 0.000000e+00 : f32
    %343 = vector.broadcast %cst_80 : f32 to vector<16x16xf32>
    %344 = arith.maximumf %342, %343 : vector<16x16xf32>
    %cst_81 = arith.constant dense<0.000000e+00> : vector<16xf32>
    %345 = vector.multi_reduction <add>, %251, %cst_81 [1] : vector<16x16xf32> to vector<16xf32>
    %346 = vector.shape_cast %345 : vector<16xf32> to vector<16x1xf32>
    %cst_82 = arith.constant dense<0.000000e+00> : vector<1xf32>
    %347 = vector.multi_reduction <add>, %346, %cst_82 [0] : vector<16x1xf32> to vector<1xf32>
    %348 = vector.shape_cast %347 : vector<1xf32> to vector<1x1xf32>
    %349 = arith.mulf %251, %251 : vector<16x16xf32>
    %cst_83 = arith.constant dense<0.000000e+00> : vector<16xf32>
    %350 = vector.multi_reduction <add>, %349, %cst_83 [1] : vector<16x16xf32> to vector<16xf32>
    %351 = vector.shape_cast %350 : vector<16xf32> to vector<16x1xf32>
    %cst_84 = arith.constant dense<0.000000e+00> : vector<1xf32>
    %352 = vector.multi_reduction <add>, %351, %cst_84 [0] : vector<16x1xf32> to vector<1xf32>
    %353 = vector.shape_cast %352 : vector<1xf32> to vector<1x1xf32>
    %cst_85 = arith.constant 3.906250e-03 : f32
    %354 = vector.broadcast %cst_85 : f32 to vector<1x1xf32>
    %355 = arith.mulf %348, %354 : vector<1x1xf32>
    %cst_86 = arith.constant 3.906250e-03 : f32
    %356 = vector.broadcast %cst_86 : f32 to vector<1x1xf32>
    %357 = arith.mulf %353, %356 : vector<1x1xf32>
    %358 = arith.mulf %355, %355 : vector<1x1xf32>
    %359 = arith.subf %357, %358 : vector<1x1xf32>
    %c7_87 = arith.constant 7 : index
    %360 = memref.load %arg2[%c7_87] : memref<12xf32, #tpu.memory_space<smem>>
    %cst_88 = arith.constant 9.99999974E-6 : f32
    %361 = vector.broadcast %cst_88 : f32 to vector<1x1xf32>
    %362 = arith.addf %359, %361 : vector<1x1xf32>
    %363 = math.rsqrt %362 : vector<1x1xf32>
    %364 = vector.broadcast %360 : f32 to vector<1x1xf32>
    %365 = arith.mulf %364, %363 : vector<1x1xf32>
    %c7_89 = arith.constant 7 : index
    %366 = memref.load %arg3[%c7_89] : memref<12xf32, #tpu.memory_space<smem>>
    %367 = arith.mulf %355, %365 : vector<1x1xf32>
    %368 = vector.broadcast %366 : f32 to vector<1x1xf32>
    %369 = arith.subf %368, %367 : vector<1x1xf32>
    %370 = vector.broadcast %365 : vector<1x1xf32> to vector<16x16xf32>
    %371 = arith.mulf %251, %370 : vector<16x16xf32>
    %372 = vector.broadcast %369 : vector<1x1xf32> to vector<16x16xf32>
    %373 = arith.addf %371, %372 : vector<16x16xf32>
    %cst_90 = arith.constant 0.000000e+00 : f32
    %374 = vector.broadcast %cst_90 : f32 to vector<16x16xf32>
    %375 = arith.maximumf %373, %374 : vector<16x16xf32>
    %c32 = arith.constant 32 : index
    %376 = memref.load %arg1[%c32] : memref<48xf32, #tpu.memory_space<smem>>
    %377 = vector.broadcast %376 : f32 to vector<16x16xf32>
    %378 = arith.mulf %377, %282 : vector<16x16xf32>
    %c33 = arith.constant 33 : index
    %379 = memref.load %arg1[%c33] : memref<48xf32, #tpu.memory_space<smem>>
    %380 = vector.broadcast %379 : f32 to vector<16x16xf32>
    %381 = arith.mulf %380, %313 : vector<16x16xf32>
    %382 = arith.addf %378, %381 : vector<16x16xf32>
    %c34 = arith.constant 34 : index
    %383 = memref.load %arg1[%c34] : memref<48xf32, #tpu.memory_space<smem>>
    %384 = vector.broadcast %383 : f32 to vector<16x16xf32>
    %385 = arith.mulf %384, %344 : vector<16x16xf32>
    %386 = arith.addf %382, %385 : vector<16x16xf32>
    %c35 = arith.constant 35 : index
    %387 = memref.load %arg1[%c35] : memref<48xf32, #tpu.memory_space<smem>>
    %388 = vector.broadcast %387 : f32 to vector<16x16xf32>
    %389 = arith.mulf %388, %375 : vector<16x16xf32>
    %390 = arith.addf %386, %389 : vector<16x16xf32>
    %c36 = arith.constant 36 : index
    %391 = memref.load %arg1[%c36] : memref<48xf32, #tpu.memory_space<smem>>
    %392 = vector.broadcast %391 : f32 to vector<16x16xf32>
    %393 = arith.mulf %392, %282 : vector<16x16xf32>
    %c37 = arith.constant 37 : index
    %394 = memref.load %arg1[%c37] : memref<48xf32, #tpu.memory_space<smem>>
    %395 = vector.broadcast %394 : f32 to vector<16x16xf32>
    %396 = arith.mulf %395, %313 : vector<16x16xf32>
    %397 = arith.addf %393, %396 : vector<16x16xf32>
    %c38 = arith.constant 38 : index
    %398 = memref.load %arg1[%c38] : memref<48xf32, #tpu.memory_space<smem>>
    %399 = vector.broadcast %398 : f32 to vector<16x16xf32>
    %400 = arith.mulf %399, %344 : vector<16x16xf32>
    %401 = arith.addf %397, %400 : vector<16x16xf32>
    %c39 = arith.constant 39 : index
    %402 = memref.load %arg1[%c39] : memref<48xf32, #tpu.memory_space<smem>>
    %403 = vector.broadcast %402 : f32 to vector<16x16xf32>
    %404 = arith.mulf %403, %375 : vector<16x16xf32>
    %405 = arith.addf %401, %404 : vector<16x16xf32>
    %c40 = arith.constant 40 : index
    %406 = memref.load %arg1[%c40] : memref<48xf32, #tpu.memory_space<smem>>
    %407 = vector.broadcast %406 : f32 to vector<16x16xf32>
    %408 = arith.mulf %407, %282 : vector<16x16xf32>
    %c41 = arith.constant 41 : index
    %409 = memref.load %arg1[%c41] : memref<48xf32, #tpu.memory_space<smem>>
    %410 = vector.broadcast %409 : f32 to vector<16x16xf32>
    %411 = arith.mulf %410, %313 : vector<16x16xf32>
    %412 = arith.addf %408, %411 : vector<16x16xf32>
    %c42 = arith.constant 42 : index
    %413 = memref.load %arg1[%c42] : memref<48xf32, #tpu.memory_space<smem>>
    %414 = vector.broadcast %413 : f32 to vector<16x16xf32>
    %415 = arith.mulf %414, %344 : vector<16x16xf32>
    %416 = arith.addf %412, %415 : vector<16x16xf32>
    %c43 = arith.constant 43 : index
    %417 = memref.load %arg1[%c43] : memref<48xf32, #tpu.memory_space<smem>>
    %418 = vector.broadcast %417 : f32 to vector<16x16xf32>
    %419 = arith.mulf %418, %375 : vector<16x16xf32>
    %420 = arith.addf %416, %419 : vector<16x16xf32>
    %c44 = arith.constant 44 : index
    %421 = memref.load %arg1[%c44] : memref<48xf32, #tpu.memory_space<smem>>
    %422 = vector.broadcast %421 : f32 to vector<16x16xf32>
    %423 = arith.mulf %422, %282 : vector<16x16xf32>
    %c45 = arith.constant 45 : index
    %424 = memref.load %arg1[%c45] : memref<48xf32, #tpu.memory_space<smem>>
    %425 = vector.broadcast %424 : f32 to vector<16x16xf32>
    %426 = arith.mulf %425, %313 : vector<16x16xf32>
    %427 = arith.addf %423, %426 : vector<16x16xf32>
    %c46 = arith.constant 46 : index
    %428 = memref.load %arg1[%c46] : memref<48xf32, #tpu.memory_space<smem>>
    %429 = vector.broadcast %428 : f32 to vector<16x16xf32>
    %430 = arith.mulf %429, %344 : vector<16x16xf32>
    %431 = arith.addf %427, %430 : vector<16x16xf32>
    %c47 = arith.constant 47 : index
    %432 = memref.load %arg1[%c47] : memref<48xf32, #tpu.memory_space<smem>>
    %433 = vector.broadcast %432 : f32 to vector<16x16xf32>
    %434 = arith.mulf %433, %375 : vector<16x16xf32>
    %435 = arith.addf %431, %434 : vector<16x16xf32>
    %cst_91 = arith.constant dense<0.000000e+00> : vector<16xf32>
    %436 = vector.multi_reduction <add>, %390, %cst_91 [1] : vector<16x16xf32> to vector<16xf32>
    %437 = vector.shape_cast %436 : vector<16xf32> to vector<16x1xf32>
    %cst_92 = arith.constant dense<0.000000e+00> : vector<1xf32>
    %438 = vector.multi_reduction <add>, %437, %cst_92 [0] : vector<16x1xf32> to vector<1xf32>
    %439 = vector.shape_cast %438 : vector<1xf32> to vector<1x1xf32>
    %440 = arith.mulf %390, %390 : vector<16x16xf32>
    %cst_93 = arith.constant dense<0.000000e+00> : vector<16xf32>
    %441 = vector.multi_reduction <add>, %440, %cst_93 [1] : vector<16x16xf32> to vector<16xf32>
    %442 = vector.shape_cast %441 : vector<16xf32> to vector<16x1xf32>
    %cst_94 = arith.constant dense<0.000000e+00> : vector<1xf32>
    %443 = vector.multi_reduction <add>, %442, %cst_94 [0] : vector<16x1xf32> to vector<1xf32>
    %444 = vector.shape_cast %443 : vector<1xf32> to vector<1x1xf32>
    %cst_95 = arith.constant 3.906250e-03 : f32
    %445 = vector.broadcast %cst_95 : f32 to vector<1x1xf32>
    %446 = arith.mulf %439, %445 : vector<1x1xf32>
    %cst_96 = arith.constant 3.906250e-03 : f32
    %447 = vector.broadcast %cst_96 : f32 to vector<1x1xf32>
    %448 = arith.mulf %444, %447 : vector<1x1xf32>
    %449 = arith.mulf %446, %446 : vector<1x1xf32>
    %450 = arith.subf %448, %449 : vector<1x1xf32>
    %c8_97 = arith.constant 8 : index
    %451 = memref.load %arg2[%c8_97] : memref<12xf32, #tpu.memory_space<smem>>
    %cst_98 = arith.constant 9.99999974E-6 : f32
    %452 = vector.broadcast %cst_98 : f32 to vector<1x1xf32>
    %453 = arith.addf %450, %452 : vector<1x1xf32>
    %454 = math.rsqrt %453 : vector<1x1xf32>
    %455 = vector.broadcast %451 : f32 to vector<1x1xf32>
    %456 = arith.mulf %455, %454 : vector<1x1xf32>
    %c8_99 = arith.constant 8 : index
    %457 = memref.load %arg3[%c8_99] : memref<12xf32, #tpu.memory_space<smem>>
    %458 = arith.mulf %446, %456 : vector<1x1xf32>
    %459 = vector.broadcast %457 : f32 to vector<1x1xf32>
    %460 = arith.subf %459, %458 : vector<1x1xf32>
    %461 = vector.broadcast %456 : vector<1x1xf32> to vector<16x16xf32>
    %462 = arith.mulf %390, %461 : vector<16x16xf32>
    %463 = vector.broadcast %460 : vector<1x1xf32> to vector<16x16xf32>
    %464 = arith.addf %462, %463 : vector<16x16xf32>
    %cst_100 = arith.constant 0.000000e+00 : f32
    %465 = vector.broadcast %cst_100 : f32 to vector<16x16xf32>
    %466 = arith.maximumf %464, %465 : vector<16x16xf32>
    %cst_101 = arith.constant dense<0.000000e+00> : vector<16xf32>
    %467 = vector.multi_reduction <add>, %405, %cst_101 [1] : vector<16x16xf32> to vector<16xf32>
    %468 = vector.shape_cast %467 : vector<16xf32> to vector<16x1xf32>
    %cst_102 = arith.constant dense<0.000000e+00> : vector<1xf32>
    %469 = vector.multi_reduction <add>, %468, %cst_102 [0] : vector<16x1xf32> to vector<1xf32>
    %470 = vector.shape_cast %469 : vector<1xf32> to vector<1x1xf32>
    %471 = arith.mulf %405, %405 : vector<16x16xf32>
    %cst_103 = arith.constant dense<0.000000e+00> : vector<16xf32>
    %472 = vector.multi_reduction <add>, %471, %cst_103 [1] : vector<16x16xf32> to vector<16xf32>
    %473 = vector.shape_cast %472 : vector<16xf32> to vector<16x1xf32>
    %cst_104 = arith.constant dense<0.000000e+00> : vector<1xf32>
    %474 = vector.multi_reduction <add>, %473, %cst_104 [0] : vector<16x1xf32> to vector<1xf32>
    %475 = vector.shape_cast %474 : vector<1xf32> to vector<1x1xf32>
    %cst_105 = arith.constant 3.906250e-03 : f32
    %476 = vector.broadcast %cst_105 : f32 to vector<1x1xf32>
    %477 = arith.mulf %470, %476 : vector<1x1xf32>
    %cst_106 = arith.constant 3.906250e-03 : f32
    %478 = vector.broadcast %cst_106 : f32 to vector<1x1xf32>
    %479 = arith.mulf %475, %478 : vector<1x1xf32>
    %480 = arith.mulf %477, %477 : vector<1x1xf32>
    %481 = arith.subf %479, %480 : vector<1x1xf32>
    %c9_107 = arith.constant 9 : index
    %482 = memref.load %arg2[%c9_107] : memref<12xf32, #tpu.memory_space<smem>>
    %cst_108 = arith.constant 9.99999974E-6 : f32
    %483 = vector.broadcast %cst_108 : f32 to vector<1x1xf32>
    %484 = arith.addf %481, %483 : vector<1x1xf32>
    %485 = math.rsqrt %484 : vector<1x1xf32>
    %486 = vector.broadcast %482 : f32 to vector<1x1xf32>
    %487 = arith.mulf %486, %485 : vector<1x1xf32>
    %c9_109 = arith.constant 9 : index
    %488 = memref.load %arg3[%c9_109] : memref<12xf32, #tpu.memory_space<smem>>
    %489 = arith.mulf %477, %487 : vector<1x1xf32>
    %490 = vector.broadcast %488 : f32 to vector<1x1xf32>
    %491 = arith.subf %490, %489 : vector<1x1xf32>
    %492 = vector.broadcast %487 : vector<1x1xf32> to vector<16x16xf32>
    %493 = arith.mulf %405, %492 : vector<16x16xf32>
    %494 = vector.broadcast %491 : vector<1x1xf32> to vector<16x16xf32>
    %495 = arith.addf %493, %494 : vector<16x16xf32>
    %cst_110 = arith.constant 0.000000e+00 : f32
    %496 = vector.broadcast %cst_110 : f32 to vector<16x16xf32>
    %497 = arith.maximumf %495, %496 : vector<16x16xf32>
    %cst_111 = arith.constant dense<0.000000e+00> : vector<16xf32>
    %498 = vector.multi_reduction <add>, %420, %cst_111 [1] : vector<16x16xf32> to vector<16xf32>
    %499 = vector.shape_cast %498 : vector<16xf32> to vector<16x1xf32>
    %cst_112 = arith.constant dense<0.000000e+00> : vector<1xf32>
    %500 = vector.multi_reduction <add>, %499, %cst_112 [0] : vector<16x1xf32> to vector<1xf32>
    %501 = vector.shape_cast %500 : vector<1xf32> to vector<1x1xf32>
    %502 = arith.mulf %420, %420 : vector<16x16xf32>
    %cst_113 = arith.constant dense<0.000000e+00> : vector<16xf32>
    %503 = vector.multi_reduction <add>, %502, %cst_113 [1] : vector<16x16xf32> to vector<16xf32>
    %504 = vector.shape_cast %503 : vector<16xf32> to vector<16x1xf32>
    %cst_114 = arith.constant dense<0.000000e+00> : vector<1xf32>
    %505 = vector.multi_reduction <add>, %504, %cst_114 [0] : vector<16x1xf32> to vector<1xf32>
    %506 = vector.shape_cast %505 : vector<1xf32> to vector<1x1xf32>
    %cst_115 = arith.constant 3.906250e-03 : f32
    %507 = vector.broadcast %cst_115 : f32 to vector<1x1xf32>
    %508 = arith.mulf %501, %507 : vector<1x1xf32>
    %cst_116 = arith.constant 3.906250e-03 : f32
    %509 = vector.broadcast %cst_116 : f32 to vector<1x1xf32>
    %510 = arith.mulf %506, %509 : vector<1x1xf32>
    %511 = arith.mulf %508, %508 : vector<1x1xf32>
    %512 = arith.subf %510, %511 : vector<1x1xf32>
    %c10_117 = arith.constant 10 : index
    %513 = memref.load %arg2[%c10_117] : memref<12xf32, #tpu.memory_space<smem>>
    %cst_118 = arith.constant 9.99999974E-6 : f32
    %514 = vector.broadcast %cst_118 : f32 to vector<1x1xf32>
    %515 = arith.addf %512, %514 : vector<1x1xf32>
    %516 = math.rsqrt %515 : vector<1x1xf32>
    %517 = vector.broadcast %513 : f32 to vector<1x1xf32>
    %518 = arith.mulf %517, %516 : vector<1x1xf32>
    %c10_119 = arith.constant 10 : index
    %519 = memref.load %arg3[%c10_119] : memref<12xf32, #tpu.memory_space<smem>>
    %520 = arith.mulf %508, %518 : vector<1x1xf32>
    %521 = vector.broadcast %519 : f32 to vector<1x1xf32>
    %522 = arith.subf %521, %520 : vector<1x1xf32>
    %523 = vector.broadcast %518 : vector<1x1xf32> to vector<16x16xf32>
    %524 = arith.mulf %420, %523 : vector<16x16xf32>
    %525 = vector.broadcast %522 : vector<1x1xf32> to vector<16x16xf32>
    %526 = arith.addf %524, %525 : vector<16x16xf32>
    %cst_120 = arith.constant 0.000000e+00 : f32
    %527 = vector.broadcast %cst_120 : f32 to vector<16x16xf32>
    %528 = arith.maximumf %526, %527 : vector<16x16xf32>
    %cst_121 = arith.constant dense<0.000000e+00> : vector<16xf32>
    %529 = vector.multi_reduction <add>, %435, %cst_121 [1] : vector<16x16xf32> to vector<16xf32>
    %530 = vector.shape_cast %529 : vector<16xf32> to vector<16x1xf32>
    %cst_122 = arith.constant dense<0.000000e+00> : vector<1xf32>
    %531 = vector.multi_reduction <add>, %530, %cst_122 [0] : vector<16x1xf32> to vector<1xf32>
    %532 = vector.shape_cast %531 : vector<1xf32> to vector<1x1xf32>
    %533 = arith.mulf %435, %435 : vector<16x16xf32>
    %cst_123 = arith.constant dense<0.000000e+00> : vector<16xf32>
    %534 = vector.multi_reduction <add>, %533, %cst_123 [1] : vector<16x16xf32> to vector<16xf32>
    %535 = vector.shape_cast %534 : vector<16xf32> to vector<16x1xf32>
    %cst_124 = arith.constant dense<0.000000e+00> : vector<1xf32>
    %536 = vector.multi_reduction <add>, %535, %cst_124 [0] : vector<16x1xf32> to vector<1xf32>
    %537 = vector.shape_cast %536 : vector<1xf32> to vector<1x1xf32>
    %cst_125 = arith.constant 3.906250e-03 : f32
    %538 = vector.broadcast %cst_125 : f32 to vector<1x1xf32>
    %539 = arith.mulf %532, %538 : vector<1x1xf32>
    %cst_126 = arith.constant 3.906250e-03 : f32
    %540 = vector.broadcast %cst_126 : f32 to vector<1x1xf32>
    %541 = arith.mulf %537, %540 : vector<1x1xf32>
    %542 = arith.mulf %539, %539 : vector<1x1xf32>
    %543 = arith.subf %541, %542 : vector<1x1xf32>
    %c11_127 = arith.constant 11 : index
    %544 = memref.load %arg2[%c11_127] : memref<12xf32, #tpu.memory_space<smem>>
    %cst_128 = arith.constant 9.99999974E-6 : f32
    %545 = vector.broadcast %cst_128 : f32 to vector<1x1xf32>
    %546 = arith.addf %543, %545 : vector<1x1xf32>
    %547 = math.rsqrt %546 : vector<1x1xf32>
    %548 = vector.broadcast %544 : f32 to vector<1x1xf32>
    %549 = arith.mulf %548, %547 : vector<1x1xf32>
    %c11_129 = arith.constant 11 : index
    %550 = memref.load %arg3[%c11_129] : memref<12xf32, #tpu.memory_space<smem>>
    %551 = arith.mulf %539, %549 : vector<1x1xf32>
    %552 = vector.broadcast %550 : f32 to vector<1x1xf32>
    %553 = arith.subf %552, %551 : vector<1x1xf32>
    %554 = vector.broadcast %549 : vector<1x1xf32> to vector<16x16xf32>
    %555 = arith.mulf %435, %554 : vector<16x16xf32>
    %556 = vector.broadcast %553 : vector<1x1xf32> to vector<16x16xf32>
    %557 = arith.addf %555, %556 : vector<16x16xf32>
    %cst_130 = arith.constant 0.000000e+00 : f32
    %558 = vector.broadcast %cst_130 : f32 to vector<16x16xf32>
    %559 = arith.maximumf %557, %558 : vector<16x16xf32>
    %c0_131 = arith.constant 0 : index
    %560 = memref.load %arg4[%c0_131] : memref<4xf32, #tpu.memory_space<smem>>
    %561 = vector.broadcast %560 : f32 to vector<16x16xf32>
    %562 = arith.mulf %466, %561 : vector<16x16xf32>
    %cst_132 = arith.constant 0.000000e+00 : f32
    %563 = vector.broadcast %cst_132 : f32 to vector<16x16xf32>
    %564 = arith.maximumf %562, %563 : vector<16x16xf32>
    %c0_133 = arith.constant 0 : index
    %c0_134 = arith.constant 0 : index
    %c0_135 = arith.constant 0 : index
    %565 = vector.load %arg5[%c0_133, %c0_134, %c0_135] : memref<4x16x16xf32, #tpu.memory_space<vmem>>, vector<1x16x16xf32>
    %566 = vector.shape_cast %565 : vector<1x16x16xf32> to vector<16x16xf32>
    %567 = vector.shape_cast %564 : vector<16x16xf32> to vector<1x16x16xf32>
    tpu.vector_store %arg5[%c0_133, %c0_134, %c0_135], %567 {strides = array<i32>} : memref<4x16x16xf32, #tpu.memory_space<vmem>>, vector<1x16x16xf32>,
    %c1_136 = arith.constant 1 : index
    %568 = memref.load %arg4[%c1_136] : memref<4xf32, #tpu.memory_space<smem>>
    %569 = vector.broadcast %568 : f32 to vector<16x16xf32>
    %570 = arith.mulf %497, %569 : vector<16x16xf32>
    %cst_137 = arith.constant 0.000000e+00 : f32
    %571 = vector.broadcast %cst_137 : f32 to vector<16x16xf32>
    %572 = arith.maximumf %570, %571 : vector<16x16xf32>
    %c1_138 = arith.constant 1 : index
    %c0_139 = arith.constant 0 : index
    %c0_140 = arith.constant 0 : index
    %573 = vector.load %arg5[%c1_138, %c0_139, %c0_140] : memref<4x16x16xf32, #tpu.memory_space<vmem>>, vector<1x16x16xf32>
    %574 = vector.shape_cast %573 : vector<1x16x16xf32> to vector<16x16xf32>
    %575 = vector.shape_cast %572 : vector<16x16xf32> to vector<1x16x16xf32>
    tpu.vector_store %arg5[%c1_138, %c0_139, %c0_140], %575 {strides = array<i32>} : memref<4x16x16xf32, #tpu.memory_space<vmem>>, vector<1x16x16xf32>,
    %c2_141 = arith.constant 2 : index
    %576 = memref.load %arg4[%c2_141] : memref<4xf32, #tpu.memory_space<smem>>
    %577 = vector.broadcast %576 : f32 to vector<16x16xf32>
    %578 = arith.mulf %528, %577 : vector<16x16xf32>
    %c2_142 = arith.constant 2 : index
    %c0_143 = arith.constant 0 : index
    %c0_144 = arith.constant 0 : index
    %579 = vector.load %arg5[%c2_142, %c0_143, %c0_144] : memref<4x16x16xf32, #tpu.memory_space<vmem>>, vector<1x16x16xf32>
    %580 = vector.shape_cast %579 : vector<1x16x16xf32> to vector<16x16xf32>
    %581 = vector.shape_cast %578 : vector<16x16xf32> to vector<1x16x16xf32>
    tpu.vector_store %arg5[%c2_142, %c0_143, %c0_144], %581 {strides = array<i32>} : memref<4x16x16xf32, #tpu.memory_space<vmem>>, vector<1x16x16xf32>,
    %c3_145 = arith.constant 3 : index
    %582 = memref.load %arg4[%c3_145] : memref<4xf32, #tpu.memory_space<smem>>
    %583 = vector.broadcast %582 : f32 to vector<16x16xf32>
    %584 = arith.mulf %559, %583 : vector<16x16xf32>
    %c3_146 = arith.constant 3 : index
    %c0_147 = arith.constant 0 : index
    %c0_148 = arith.constant 0 : index
    %585 = vector.load %arg5[%c3_146, %c0_147, %c0_148] : memref<4x16x16xf32, #tpu.memory_space<vmem>>, vector<1x16x16xf32>
    %586 = vector.shape_cast %585 : vector<1x16x16xf32> to vector<16x16xf32>
    %587 = vector.shape_cast %584 : vector<16x16xf32> to vector<1x16x16xf32>
    tpu.vector_store %arg5[%c3_146, %c0_147, %c0_148], %587 {strides = array<i32>} : memref<4x16x16xf32, #tpu.memory_space<vmem>>, vector<1x16x16xf32>,
    return
  }
}

</mosaic_0001>

<bundles_post_ra>
// kernel: tpu_custom_call.1
= control target key start
LH: loop header
LB: loop body
LE: loop exit
PB: predicated region body
PF: predicated region fallthrough
CT: control target
= control target key end

     0   :  { %10 = vsyncpa [#allocation3], 0  ;;  %s1782_s0 = inlined_call_operand.hbm [shape: f32[4,16,16], index: 0, kind: input, shape index: {}]   ;;  %s1783_s1 = inlined_call_operand.vmem [shape: f32[48], index: 1, kind: input, shape index: {}]   ;;  %s1784_s2 = inlined_call_operand.vmem [shape: f32[12], index: 2, kind: input, shape index: {}]   ;;  %s1785_s3 = inlined_call_operand.vmem [shape: f32[12], index: 3, kind: input, shape index: {}]   ;;  %s1786_s4 = inlined_call_operand.vmem [shape: f32[4], index: 4, kind: input, shape index: {}]   ;;  %s1787_s5 = inlined_call_operand.hbm [shape: f32[4,16,16], index: 5, kind: output, shape index: {}]  }
   0x1   :  { %11 = vsyncpa [#allocation5], 0 }
   0x2   :  { %12 = vsyncpa [#allocation8], 0 }
   0x3   :  { %13 = vsyncpa [#allocation11], 0  ;;  %s43_s20 = sshll.u32 %s1784_s2, 4  ;;  %s44_s20 = int_to_ptr.vmem [resolvable:$true] %s43_s20 }
   0x4   :  { %14 = vsyncpa [#allocation4], 0  ;;  %s1078_s21 = scalar_lea.vmem %s44_s20, 16  ;;  %p1083_p1 = scmp.lt.s32.totalorder %s44_s20, %s44_s20 }
   0x5   :  { %p1079_p0 = scmp.ne.s32.totalorder %s44_s20, %s1078_s21  ;;  %p1084_p2 = scmp.lt.s32.totalorder %s1078_s21, %s1078_s21 }
   0x7   :  { %p1085_p3 = por %p1084_p2, %p1083_p1 }
   0x9   :  { %p1086_p4 = pnand %p1085_p3, %p1079_p0 }
   0xb   :  { %1089 = shalt.err (!%p1086_p4)
}
   0xc   :  { %s1176_s22 = smov [#allocation7]   ;;  %s1177_s23 = smov [#allocation2]  }
   0xd   :  { %46 = dma.vmem_to_smem %s44_s20, 16, %s1176_s22, [#allocation8]  }
   0xe   :  { %s20_s24 = sshll.u32 %s1177_s23, 4  ;;  %s21_s24 = int_to_ptr.vmem [resolvable:$true] %s20_s24 }
   0xf   :  { %s1098_s25 = scalar_lea.vmem %s21_s24, 1024  ;;  %p1103_p6 = scmp.lt.s32.totalorder %s21_s24, %s21_s24 }
  0x10   :  { %p1099_p5 = scmp.ne.s32.totalorder %s21_s24, %s1098_s25  ;;  %p1104_p7 = scmp.lt.s32.totalorder %s1098_s25, %s1098_s25 }
  0x12   :  { %p1105_p8 = por %p1104_p7, %p1103_p6 }
  0x14   :  { %p1106_p9 = pnand %p1105_p8, %p1099_p5 }
  0x16   :  { %1109 = shalt.err (!%p1106_p9)
}
  0x17   :  { %s1178_s2 = smov 128   ;;  %s1179_s26 = smov 8  }
  0x18   :  { %26 = dma.hbm_to_vmem [thread:$0]  %s1782_s0, 1024, %s21_s24, [#allocation3], %s1178_s2, %s1178_s2, %s1179_s26  }
  0x19   :  { %s33_s6 = sshll.u32 %s1783_s1, 4  ;;  %s53_s9 = sshll.u32 %s1785_s3, 4  ;;  %s34_s6 = int_to_ptr.vmem [resolvable:$true] %s33_s6  ;;  %s54_s9 = int_to_ptr.vmem [resolvable:$true] %s53_s9 }
  0x1a   :  { %s1110_s10 = scalar_lea.vmem %s34_s6, 16  ;;  %p1115_p11 = scmp.lt.s32.totalorder %s34_s6, %s34_s6 }
  0x1b   :  { %p1111_p10 = scmp.ne.s32.totalorder %s34_s6, %s1110_s10  ;;  %p1116_p12 = scmp.lt.s32.totalorder %s1110_s10, %s1110_s10 }
  0x1d   :  { %p1117_p13 = por %p1116_p12, %p1115_p11 }
  0x1f   :  { %p1118_p0 = pnand %p1117_p13, %p1111_p10 }
  0x21   :  { %1121 = shalt.err (!%p1118_p0)
}
  0x22   :  { %s1180_s11 = smov [#allocation6]   ;;  %s1122_s0 = scalar_lea.vmem %s54_s9, 16 }
  0x23   :  { %36 = dma.vmem_to_smem %s34_s6, 16, %s1180_s11, [#allocation5]  }
  0x24   :  { %p1123_p1 = scmp.ne.s32.totalorder %s54_s9, %s1122_s0  ;;  %p1127_p2 = scmp.lt.s32.totalorder %s54_s9, %s54_s9 }
  0x25   :  { %p1128_p3 = scmp.lt.s32.totalorder %s1122_s0, %s1122_s0 }
  0x27   :  { %p1129_p4 = por %p1128_p3, %p1127_p2 }
  0x29   :  { %p1130_p5 = pnand %p1129_p4, %p1123_p1 }
  0x2b   :  { %1133 = shalt.err (!%p1130_p5)
}
  0x2c   :  { %s1181_s1 = smov [#allocation9]   ;;  %s63_s13 = sshll.u32 %s1786_s4, 4  ;;  %s64_s13 = int_to_ptr.vmem [resolvable:$true] %s63_s13 }
  0x2d   :  { %56 = dma.vmem_to_smem %s54_s9, 16, %s1181_s1, [#allocation8]  }
  0x2e   :  { %s1134_s14 = scalar_lea.vmem %s64_s13, 16  ;;  %p1139_p7 = scmp.lt.s32.totalorder %s64_s13, %s64_s13 }
  0x2f   :  { %p1135_p6 = scmp.ne.s32.totalorder %s64_s13, %s1134_s14  ;;  %p1140_p8 = scmp.lt.s32.totalorder %s1134_s14, %s1134_s14 }
  0x31   :  { %p1141_p9 = por %p1140_p8, %p1139_p7 }
  0x33   :  { %p1142_p10 = pnand %p1141_p9, %p1135_p6 }
  0x35   :  { %1145 = shalt.err (!%p1142_p10)
}
  0x36   :  { %s1182_s15 = smov [#allocation10]  }
  0x37   :  { %66 = dma.vmem_to_smem %s64_s13, 16, %s1182_s15, [#allocation11]  }
  0x38   :  { %1166 = dma.done.wait [#allocation3], 1024  }
  0x39   :  { %1167 = vsyncadd [#allocation3], 4294966272 }
  0x3a   :  { %1168 = dma.done.wait [#allocation5], 16  }
  0x3b   :  { %1169 = vsyncadd [#allocation5], 4294967280 }
  0x3c   :  { %1170 = dma.done.wait [#allocation8], 32  }
  0x3d   :  { %1171 = vsyncadd [#allocation8], 4294967264 }
  0x3e   :  { %1172 = dma.done.wait [#allocation11], 16  }
  0x3f   :  { %1173 = vsyncadd [#allocation11], 4294967280 }
  0x40   :  { %82 = sfence }
  0x41   :  { %s977_s4 = sld [smem:[#allocation6 + $0x4]]  ;;  %v1234_v0 = vld [vmem:[#allocation2] sm:$0xff]  ;;  %v1238_v1 = vld [vmem:[#allocation2 + $0x8] sm:$0xff]  ;;  %v1240_v2 = vld [vmem:[#allocation2 + $0x10] sm:$0xff]  ;;  %vm182_vm0 = vcmask 130048  }
  0x42   :  { %s978_s16 = sld [smem:[#allocation6 + $0x5]]  ;;  %v1244_v3 = vld [vmem:[#allocation2 + $0x18] sm:$0xff]  ;;  %v1246_v4 = vld [vmem:[#allocation2 + $0x20] sm:$0xff]  ;;  %v1250_v6 = vld [vmem:[#allocation2 + $0x28] sm:$0xff] }
  0x43   :  { %s979_s17 = sld [smem:[#allocation6 + $0x6]]  ;;  %v1252_v7 = vld [vmem:[#allocation2 + $0x30] sm:$0xff]  ;;  %v1259_v13 = vld [vmem:[#allocation2 + $0x38] sm:$0xff] }
  0x44   :  { %s1232_s18 = sld [smem:[#allocation6 + $0x7]] }
  0x45   :  { %s1236_s19 = sld [smem:[#allocation6]] }
  0x46   :  { %s1242_s20 = sld [smem:[#allocation6 + $0x1]] }
  0x47   :  { %v117_v5 = vstv %s977_s4  ;;  %s1248_s21 = sld [smem:[#allocation6 + $0x2]] }
  0x48   :  { %v118_v8 = vmul.f32 %v117_v5, %v1234_v0  ;;  %v121_v9 = vstv %s978_s16  ;;  %s1255_s22 = sld [smem:[#allocation6 + $0x3]]  ;;  %v119_v10 = vmul.f32 %v117_v5, %v1238_v1 }
  0x49   :  { %v122_v11 = vmul.f32 %v121_v9, %v1240_v2  ;;  %v127_v12 = vstv %s979_s17  ;;  %v123_v14 = vmul.f32 %v121_v9, %v1244_v3  ;;  %s1262_s23 = sld [smem:[#allocation6 + $0x8]] }
  0x4a   :  { %v128_v15 = vmul.f32 %v127_v12, %v1246_v4  ;;  %v133_v16 = vstv %s1232_s18  ;;  %v129_v17 = vmul.f32 %v127_v12, %v1250_v6  ;;  %s1267_s24 = sld [smem:[#allocation6 + $0x9]] }
  0x4b   :  { %v124_v18 = vadd.f32 %v122_v11, %v118_v8  ;;  %v134_v19 = vmul.f32 %v133_v16, %v1252_v7  ;;  %v95_v20 = vstv %s1236_s19  ;;  %v125_v21 = vadd.f32 %v123_v14, %v119_v10  ;;  %s1271_s25 = sld [smem:[#allocation6 + $0xa]] }
  0x4c   :  { %v96_v22 = vmul.f32 %v95_v20, %v1234_v0  ;;  %v99_v23 = vstv %s1242_s20  ;;  %v135_v24 = vmul.f32 %v133_v16, %v1259_v13  ;;  %v97_v25 = vmul.f32 %v95_v20, %v1238_v1  ;;  %s1277_s27 = sld [smem:[#allocation6 + $0xb]] }
  0x4d   :  { %v130_v26 = vadd.f32 %v128_v15, %v124_v18  ;;  %v100_v27 = vmul.f32 %v99_v23, %v1240_v2  ;;  %v105_v28 = vstv %s1248_s21  ;;  %v131_v29 = vadd.f32 %v129_v17, %v125_v21  ;;  %s1290_s28 = sld [smem:[#allocation6 + $0xc]] }
  0x4e   :  { %v106_v30 = vmul.f32 %v105_v28, %v1246_v4  ;;  %v111_v31 = vstv %s1255_s22  ;;  %v101_v32 = vmul.f32 %v99_v23, %v1244_v3  ;;  %v107_v33 = vmul.f32 %v105_v28, %v1250_v6  ;;  %s1295_s29 = sld [smem:[#allocation6 + $0xd]] }
  0x4f   :  { %v1285_v34 = vadd.f32 %v134_v19, %v130_v26  ;;  %v102_v35 = vadd.f32 %v100_v27, %v96_v22  ;;  %v112_v36 = vmul.f32 %v111_v31, %v1252_v7  ;;  %v1288_v37 = vadd.f32 %v135_v24, %v131_v29  ;;  %s1302_s30 = sld [smem:[#allocation6 + $0xe]] }
  0x50   :  { %v103_v38 = vadd.f32 %v101_v32, %v97_v25  ;;  %v113_v39 = vmul.f32 %v111_v31, %v1259_v13  ;;  %v139_v40 = vstv %s1262_s23  ;;  %v143_v41 = vstv %s1267_s24  ;;  %s1318_s6 = sld [smem:[#allocation6 + $0xf]] }
  0x51   :  { %v230_v42 = vsel %vm182_vm0, %v1285_v34, 0.0  ;;  %v108_v43 = vadd.f32 %v106_v30, %v102_v35  ;;  %v233_v44 = vsel %vm182_vm0, %v1288_v37, 0.0  ;;  %v141_v45 = vmul.f32 %v139_v40, %v1238_v1  ;;  %s1385_s7 = sld [smem:[#allocation7]] }
  0x52   :  { %231 = vadd.xlane.f32.xlu1 %v230_v42  ;;  %v109_v46 = vadd.f32 %v107_v33, %v103_v38  ;;  %v145_v47 = vmul.f32 %v143_v41, %v1244_v3  ;;  %v149_v48 = vstv %s1271_s25  ;;  %v155_v49 = vstv %s1277_s27  ;;  %s1389_s8 = sld [smem:[#allocation7 + $0x1]] }
  0x53   :  { %v1307_v50 = vadd.f32 %v112_v36, %v108_v43  ;;  %v151_v51 = vmul.f32 %v149_v48, %v1250_v6  ;;  %v157_v52 = vmul.f32 %v155_v49, %v1259_v13  ;;  %v140_v53 = vmul.f32 %v139_v40, %v1234_v0  ;;  %s1391_s9 = sld [smem:[#allocation9]] }
  0x54   :  { %v1312_v54 = vadd.f32 %v113_v39, %v109_v46  ;;  %v147_v55 = vadd.f32 %v145_v47, %v141_v45  ;;  %v144_v56 = vmul.f32 %v143_v41, %v1240_v2  ;;  %v150_v57 = vmul.f32 %v149_v48, %v1246_v4  ;;  %s1393_s10 = sld [smem:[#allocation9 + $0x1]] }
  0x55   :  { %v183_v58 = vsel %vm182_vm0, %v1307_v50, 0.0  ;;  %v156_v61 = vmul.f32 %v155_v49, %v1252_v7  ;;  %v161_v63 = vstv %s1290_s28  ;;  %v165_v11 = vstv %s1295_s29  ;;  %s1395_s11 = sld [smem:[#allocation7 + $0x2]] }
  0x56   :  { %184 = vadd.xlane.f32.xlu0 %v183_v58  ;;  %234 = vadd.xlane.f32.xlu1 %v233_v44  ;;  %v153_v59 = vadd.f32 %v151_v51, %v147_v55  ;;  %v146_v60 = vadd.f32 %v144_v56, %v140_v53  ;;  %v186_v62 = vsel %vm182_vm0, %v1312_v54, 0.0  ;;  %v197_v9 = vmul.f32 %v1312_v54, %v1312_v54  ;;  %s1399_s0 = sld [smem:[#allocation6 + $0x10]] }
  0x57   :  { %v163_v10 = vmul.f32 %v161_v63, %v1238_v1  ;;  %v171_v12 = vstv %s1302_s30  ;;  %v167_v16 = vmul.f32 %v165_v11, %v1244_v3  ;;  %v196_v17 = vmul.f32 %v1307_v50, %v1307_v50  ;;  %s1401_s1 = sld [smem:[#allocation6 + $0x14]] }
  0x58   :  { %v1324_v5 = vadd.f32 %v157_v52, %v153_v59  ;;  %v152_v8 = vadd.f32 %v150_v57, %v146_v60  ;;  %v244_v18 = vmul.f32 %v1288_v37, %v1288_v37  ;;  %v162_v1 = vmul.f32 %v161_v63, %v1234_v0  ;;  %s1403_s3 = sld [smem:[#allocation9 + $0x2]] }
  0x59   :  { %v166_v19 = vmul.f32 %v165_v11, %v1240_v2  ;;  %v201_v21 = vsel %vm182_vm0, %v197_v9, 0.0  ;;  %v169_v22 = vadd.f32 %v167_v16, %v163_v10  ;;  %v173_v23 = vmul.f32 %v171_v12, %v1250_v6  ;;  %s1405_s12 = sld [smem:[#allocation6 + $0x18]] }
  0x5a   :  { %187 = vadd.xlane.f32.xlu0 %v186_v62  ;;  %v280_v14 = vsel %vm182_vm0, %v1324_v5, 0.0  ;;  %v1333_v15 = vadd.f32 %v156_v61, %v152_v8  ;;  %v177_v3 = vstv %s1318_s6  ;;  %v198_v24 = vsel %vm182_vm0, %v196_v17, 0.0  ;;  %s1409_s13 = sld [smem:[#allocation6 + $0x11]] }
  0x5b   :  { %281 = vadd.xlane.f32.xlu1 %v280_v14  ;;  %v243_v25 = vmul.f32 %v1285_v34, %v1285_v34  ;;  %v168_v26 = vadd.f32 %v166_v19, %v162_v1  ;;  %v172_v0 = vmul.f32 %v171_v12, %v1246_v4  ;;  %v248_v2 = vsel %vm182_vm0, %v244_v18, 0.0  ;;  %s1412_s14 = sld [smem:[#allocation6 + $0x15]] }
  0x5c   :  { %v277_v20 = vsel %vm182_vm0, %v1333_v15, 0.0  ;;  %v291_v27 = vmul.f32 %v1324_v5, %v1324_v5  ;;  %v175_v28 = vadd.f32 %v173_v23, %v169_v22  ;;  %v179_v29 = vmul.f32 %v177_v3, %v1259_v13  ;;  %s1414_s15 = sld [smem:[#allocation7 + $0x3]] }
  0x5d   :  { %v245_v6 = vsel %vm182_vm0, %v243_v25, 0.0  ;;  %v290_v30 = vmul.f32 %v1333_v15, %v1333_v15  ;;  %v174_v31 = vadd.f32 %v172_v0, %v168_v26  ;;  %v178_v32 = vmul.f32 %v177_v3, %v1252_v7  ;;  %s1416_s4 = sld [smem:[#allocation6 + $0x19]] }
  0x5e   :  { %278 = vadd.xlane.f32.xlu0 %v277_v20  ;;  %v295_v4 = vsel %vm182_vm0, %v291_v27, 0.0  ;;  %v1360_v33 = vadd.f32 %v179_v29, %v175_v28  ;;  %s1418_s16 = sld [smem:[#allocation6 + $0x12]] }
  0x5f   :  { %202 = vadd.xlane.f32.xlu1 %v201_v21  ;;  %v292_v35 = vsel %vm182_vm0, %v290_v30, 0.0  ;;  %v1363_v36 = vadd.f32 %v178_v32, %v174_v31  ;;  %s1420_s17 = sld [smem:[#allocation6 + $0x16]] }
  0x60   :  { %v327_v13 = vsel %vm182_vm0, %v1360_v33, 0.0  ;;  %v338_v38 = vmul.f32 %v1360_v33, %v1360_v33  ;;  %s1424_s18 = sld [smem:[#allocation9 + $0x3]] }
  0x61   :  { %v324_v7 = vsel %vm182_vm0, %v1363_v36, 0.0  ;;  %v337_v39 = vmul.f32 %v1363_v36, %v1363_v36  ;;  %s1427_s19 = sld [smem:[#allocation6 + $0x1a]] }
  0x62   :  { %199 = vadd.xlane.f32.xlu0 %v198_v24  ;;  %v342_v40 = vsel %vm182_vm0, %v338_v38, 0.0  ;;  %s1429_s20 = sld [smem:[#allocation6 + $0x1c]] }
  0x63   :  { %249 = vadd.xlane.f32.xlu1 %v248_v2  ;;  %v339_v41 = vsel %vm182_vm0, %v337_v39, 0.0  ;;  %s1432_s21 = sld [smem:[#allocation6 + $0x1d]] }
  0x64   :  { %s1435_s22 = sld [smem:[#allocation6 + $0x13]] }
  0x65   :  { %s1438_s23 = sld [smem:[#allocation6 + $0x17]] }
  0x66   :  { %246 = vadd.xlane.f32.xlu0 %v245_v6  ;;  %s1443_s24 = sld [smem:[#allocation6 + $0x1b]] }
  0x67   :  { %296 = vadd.xlane.f32.xlu1 %v295_v4  ;;  %s1448_s25 = sld [smem:[#allocation6 + $0x1e]] }
  0x68   :  { %s1453_s27 = sld [smem:[#allocation6 + $0x1f]] }
  0x69   :  { %s1553_s28 = sld [smem:[#allocation7 + $0x4]] }
  0x6a   :  { %293 = vadd.xlane.f32.xlu0 %v292_v35  ;;  %s1555_s29 = sld [smem:[#allocation7 + $0x5]] }
  0x6b   :  { %328 = vadd.xlane.f32.xlu1 %v327_v13  ;;  %s1561_s30 = sld [smem:[#allocation9 + $0x4]] }
  0x6c   :  { %s1563_s6 = sld [smem:[#allocation9 + $0x5]] }
  0x6e   :  { %325 = vadd.xlane.f32.xlu0 %v324_v7 }
  0x6f   :  { %343 = vadd.xlane.f32.xlu1 %v342_v40 }
  0x72   :  { %340 = vadd.xlane.f32.xlu0 %v339_v41 }
  0xdb   :  { %v232_v42 = vpop.xlane.xlu1 %231 }
  0xdf   :  { %v185_v43 = vpop.xlane.xlu0 %184  ;;  %v235_v44 = vpop.xlane.xlu1 %234 }
  0xe0   :  { %v236_v45 = vadd.f32 %v235_v44, %v232_v42 }
  0xe2   :  { %v237_v46 = vrot.slane %v236_v45, 4 }
  0xe3   :  { %v188_v47 = vpop.xlane.xlu0 %187 }
  0xe4   :  { %v189_v48 = vadd.f32 %v188_v47, %v185_v43  ;;  %v282_v49 = vpop.xlane.xlu1 %281  ;;  %v238_v52 = vadd.f32 %v237_v46, %v236_v45 }
  0xe6   :  { %v190_v51 = vrot.slane %v189_v48, 4  ;;  %v239_v60 = vrot.slane %v238_v52, 2 }
  0xe7   :  { %v279_v53 = vpop.xlane.xlu0 %278 }
  0xe8   :  { %v191_v55 = vadd.f32 %v190_v51, %v189_v48  ;;  %v283_v56 = vadd.f32 %v282_v49, %v279_v53  ;;  %v203_v57 = vpop.xlane.xlu1 %202  ;;  %v240_v14 = vadd.f32 %v239_v60, %v238_v52 }
  0xea   :  { %v192_v58 = vrot.slane %v191_v55, 2  ;;  %v284_v59 = vrot.slane %v283_v56, 4  ;;  %v241_v22 = vrot.slane %v240_v14, 1 }
  0xeb   :  { %v200_v61 = vpop.xlane.xlu0 %199 }
  0xec   :  { %v193_v62 = vadd.f32 %v192_v58, %v191_v55  ;;  %v285_v63 = vadd.f32 %v284_v59, %v283_v56  ;;  %v204_v8 = vadd.f32 %v203_v57, %v200_v61  ;;  %v250_v9 = vpop.xlane.xlu1 %249  ;;  %v242_v6 = vadd.f32 %v241_v22, %v240_v14 }
  0xee   :  { %v194_v10 = vrot.slane %v193_v62, 1  ;;  %v286_v11 = vrot.slane %v285_v63, 2  ;;  %v205_v12 = vrot.slane %v204_v8, 4  ;;  %v1379_v43 = vmul.f32 0.00390625, %v242_v6 }
  0xef   :  { %v247_v16 = vpop.xlane.xlu0 %246 }
  0xf0   :  { %v206_v17 = vadd.f32 %v205_v12, %v204_v8  ;;  %v297_v18 = vpop.xlane.xlu1 %296  ;;  %v287_v1 = vadd.f32 %v286_v11, %v285_v63  ;;  %v251_v19 = vadd.f32 %v250_v9, %v247_v16  ;;  %v195_v20 = vadd.f32 %v194_v10, %v193_v62 }
  0xf1   :  { %v260_v58 = vmul.f32 %v1379_v43, %v1379_v43 }
  0xf2   :  { %v207_v21 = vrot.slane %v206_v17, 2  ;;  %v252_v23 = vrot.slane %v251_v19, 4  ;;  %v288_v0 = vrot.slane %v287_v1, 1  ;;  %v1375_v27 = vmul.f32 0.00390625, %v195_v20 }
  0xf3   :  { %v294_v3 = vpop.xlane.xlu0 %293 }
  0xf4   :  { %v208_v24 = vadd.f32 %v207_v21, %v206_v17  ;;  %v298_v25 = vadd.f32 %v297_v18, %v294_v3  ;;  %v329_v26 = vpop.xlane.xlu1 %328  ;;  %v253_v2 = vadd.f32 %v252_v23, %v251_v19  ;;  %v289_v13 = vadd.f32 %v288_v0, %v287_v1 }
  0xf5   :  { %v213_v39 = vmul.f32 %v1375_v27, %v1375_v27  ;;  %v218_v23 = vstv %s1385_s7  ;;  %v265_v0 = vstv %s1389_s8  ;;  %s1565_s7 = sld [smem:[#allocation7 + $0x6]] }
  0xf6   :  { %v209_v28 = vrot.slane %v208_v24, 1  ;;  %v299_v29 = vrot.slane %v298_v25, 4  ;;  %v254_v30 = vrot.slane %v253_v2, 2  ;;  %v1381_v51 = vmul.f32 0.00390625, %v289_v13  ;;  %s1567_s8 = sld [smem:[#allocation9 + $0x6]] }
  0xf7   :  { %v326_v31 = vpop.xlane.xlu0 %325 }
  0xf8   :  { %v210_v32 = vadd.f32 %v209_v28, %v208_v24  ;;  %v300_v4 = vadd.f32 %v299_v29, %v298_v25  ;;  %v330_v35 = vadd.f32 %v329_v26, %v326_v31  ;;  %v255_v38 = vadd.f32 %v254_v30, %v253_v2  ;;  %v344_v7 = vpop.xlane.xlu1 %343 }
  0xf9   :  { %v307_v8 = vmul.f32 %v1381_v51, %v1381_v51  ;;  %v222_v28 = vstv %s1391_s9  ;;  %v312_v30 = vstv %s1395_s11  ;;  %s1571_s9 = sld [smem:[#allocation6 + $0x20]] }
  0xfa   :  { %v212_v40 = vmul.f32 0.00390625, %v210_v32  ;;  %v301_v41 = vrot.slane %v300_v4, 2  ;;  %v331_v42 = vrot.slane %v330_v35, 4  ;;  %v256_v44 = vrot.slane %v255_v38, 1  ;;  %s1577_s11 = sld [smem:[#allocation6 + $0x24]] }
  0xfb   :  { %v341_v45 = vpop.xlane.xlu0 %340  ;;  %v269_v32 = vstv %s1393_s10  ;;  %s1575_s10 = sld [smem:[#allocation7 + $0x7]] }
  0xfc   :  { %v214_v46 = vsub.f32 %v212_v40, %v213_v39  ;;  %v302_v47 = vadd.f32 %v301_v41, %v300_v4  ;;  %v332_v48 = vadd.f32 %v331_v42, %v330_v35  ;;  %v345_v49 = vadd.f32 %v344_v7, %v341_v45 }
  0xfd   :  { %v257_v52 = vadd.f32 %v256_v44, %v255_v38  ;;  %v316_v38 = vstv %s1403_s3  ;;  %v372_v7 = vstv %s1399_s0  ;;  %v394_v44 = vstv %s1401_s1  ;;  %s1579_s0 = sld [smem:[#allocation9 + $0x7]] }
  0xfe   :  { %v216_v53 = vadd.f32 1e-05, %v214_v46  ;;  %v303_v55 = vrot.slane %v302_v47, 1  ;;  %v333_v56 = vrot.slane %v332_v48, 2  ;;  %v346_v57 = vrot.slane %v345_v49, 4  ;;  %s1583_s1 = sld [smem:[#allocation6 + $0x21]] }
  0xff   :  { %v259_v59 = vmul.f32 0.00390625, %v257_v52  ;;  %v416_v45 = vstv %s1405_s12  ;;  %v376_v46 = vstv %s1409_s13  ;;  %v398_v52 = vstv %s1412_s14  ;;  %s1585_s3 = sld [smem:[#allocation6 + $0x25]] }
 0x100   :  { %1054 = vrsqrt.f32 %v216_v53  ;;  %v304_v60 = vadd.f32 %v303_v55, %v302_v47  ;;  %v334_v61 = vadd.f32 %v333_v56, %v332_v48  ;;  %v347_v62 = vadd.f32 %v346_v57, %v345_v49  ;;  %s1587_s12 = sld [smem:[#allocation6 + $0x28]] }
 0x101   :  { %v261_v63 = vsub.f32 %v259_v59, %v260_v58  ;;  %v359_v53 = vstv %s1414_s15  ;;  %v404_v55 = vstv %s1420_s17  ;;  %v420_v56 = vstv %s1416_s4  ;;  %s1589_s13 = sld [smem:[#allocation6 + $0x22]] }
 0x102   :  { %v306_v9 = vmul.f32 0.00390625, %v304_v60  ;;  %v335_v10 = vrot.slane %v334_v61, 1  ;;  %v348_v11 = vrot.slane %v347_v62, 2  ;;  %v363_v59 = vstv %s1424_s18  ;;  %s1591_s14 = sld [smem:[#allocation6 + $0x23]] }
 0x103   :  { %v263_v12 = vadd.f32 1e-05, %v261_v63  ;;  %v426_v63 = vstv %s1427_s19  ;;  %s1593_s15 = sld [smem:[#allocation6 + $0x26]] }
 0x104   :  { %v308_v14 = vsub.f32 %v306_v9, %v307_v8  ;;  %v336_v16 = vadd.f32 %v335_v10, %v334_v61  ;;  %v349_v17 = vadd.f32 %v348_v11, %v347_v62  ;;  %v388_v9 = vstv %s1435_s22  ;;  %s1596_s4 = sld [smem:[#allocation6 + $0x29]] }
 0x105   :  { %1056 = vrsqrt.f32 %v263_v12  ;;  %v438_v10 = vstv %s1429_s20  ;;  %v442_v11 = vstv %s1432_s21  ;;  %s1600_s17 = sld [smem:[#allocation6 + $0x2a]] }
 0x106   :  { %v310_v18 = vadd.f32 1e-05, %v308_v14  ;;  %v1397_v1 = vmul.f32 0.00390625, %v336_v16  ;;  %v350_v19 = vrot.slane %v349_v17, 1  ;;  %v410_v16 = vstv %s1438_s23  ;;  %s1603_s18 = sld [smem:[#allocation6 + $0x2b]] }
 0x107   :  { %s1607_s19 = sld [smem:[#allocation6 + $0x2c]] }
 0x108   :  { %1058 = vrsqrt.f32 %v310_v18  ;;  %v351_v20 = vadd.f32 %v350_v19, %v349_v17  ;;  %v354_v21 = vmul.f32 %v1397_v1, %v1397_v1  ;;  %v432_v17 = vstv %s1443_s24  ;;  %s1613_s20 = sld [smem:[#allocation6 + $0x2d]] }
 0x109   :  { %s1621_s21 = sld [smem:[#allocation6 + $0x2e]] }
 0x10a   :  { %v353_v22 = vmul.f32 0.00390625, %v351_v20  ;;  %v448_v20 = vstv %s1448_s25  ;;  %s1658_s22 = sld [smem:[#allocation6 + $0x2f]] }
 0x10b   :  { %s1035_s23 = sld [smem:[#allocation7 + $0x8]] }
 0x10c   :  { %v355_v3 = vsub.f32 %v353_v22, %v354_v21  ;;  %v454_v21 = vstv %s1453_s27  ;;  %s1037_s24 = sld [smem:[#allocation7 + $0x9]] }
 0x10d   :  { %v1055_v24 = vpop.eup %1054  ;;  %s1036_s25 = sld [smem:[#allocation9 + $0x8]] }
 0x10e   :  { %v219_v25 = vmul.f32 %v1055_v24, %v218_v23  ;;  %v357_v26 = vadd.f32 1e-05, %v355_v3  ;;  %s1039_s27 = sld [smem:[#allocation7 + $0xa]] }
 0x110   :  { %1060 = vrsqrt.f32 %v357_v26  ;;  %v221_v2 = vmul.f32 %v219_v25, %v1375_v27  ;;  %v225_v35 = vmul.f32 %v219_v25, %v1312_v54  ;;  %v224_v41 = vmul.f32 %v219_v25, %v1307_v50 }
 0x112   :  { %v1057_v29 = vpop.eup %1056  ;;  %v223_v31 = vsub.f32 %v222_v28, %v221_v2 }
 0x113   :  { %v266_v6 = vmul.f32 %v1057_v29, %v265_v0 }
 0x114   :  { %v227_v54 = vadd.f32 %v225_v35, %v223_v31  ;;  %v226_v47 = vadd.f32 %v224_v41, %v223_v31 }
 0x115   :  { %v1059_v27 = vpop.eup %1058  ;;  %v268_v4 = vmul.f32 %v266_v6, %v1379_v43  ;;  %v272_v40 = vmul.f32 %v266_v6, %v1288_v37  ;;  %v271_v42 = vmul.f32 %v266_v6, %v1285_v34 }
 0x116   :  { %v313_v13 = vmul.f32 %v1059_v27, %v312_v30  ;;  %v1463_v57 = vmax.f32 %v227_v54, 0.0 }
 0x117   :  { %v270_v39 = vsub.f32 %v269_v32, %v268_v4 }
 0x118   :  { %v315_v43 = vmul.f32 %v313_v13, %v1381_v51  ;;  %v319_v34 = vmul.f32 %v313_v13, %v1324_v5  ;;  %v318_v49 = vmul.f32 %v313_v13, %v1333_v15  ;;  %v382_v51 = vstv %s1418_s16  ;;  %s1598_s16 = sld [smem:[#allocation6 + $0x27]] }
 0x119   :  { %v274_v37 = vadd.f32 %v272_v40, %v270_v39  ;;  %v273_v50 = vadd.f32 %v271_v42, %v270_v39  ;;  %v1466_v15 = vmax.f32 %v226_v47, 0.0  ;;  %v374_v19 = vmul.f32 %v372_v7, %v1463_v57 }
 0x11a   :  { %v317_v48 = vsub.f32 %v316_v38, %v315_v43  ;;  %v396_v24 = vmul.f32 %v394_v44, %v1463_v57  ;;  %v418_v32 = vmul.f32 %v416_v45, %v1463_v57 }
 0x11b   :  { %v276_v5 = vmax.f32 %v274_v37, 0.0  ;;  %v275_v62 = vmax.f32 %v273_v50, 0.0  ;;  %v373_v23 = vmul.f32 %v372_v7, %v1466_v15  ;;  %v395_v2 = vmul.f32 %v394_v44, %v1466_v15 }
 0x11c   :  { %v321_v58 = vadd.f32 %v319_v34, %v317_v48  ;;  %v320_v60 = vadd.f32 %v318_v49, %v317_v48 }
 0x11d   :  { %v1061_v61 = vpop.eup %1060  ;;  %v378_v22 = vmul.f32 %v376_v46, %v276_v5  ;;  %v377_v3 = vmul.f32 %v376_v46, %v275_v62  ;;  %v399_v6 = vmul.f32 %v398_v52, %v275_v62  ;;  %v422_v27 = vmul.f32 %v420_v56, %v276_v5 }
 0x11e   :  { %v360_v8 = vmul.f32 %v1061_v61, %v359_v53  ;;  %v323_v12 = vmax.f32 %v321_v58, 0.0  ;;  %v322_v14 = vmax.f32 %v320_v60, 0.0  ;;  %v443_v58 = vmul.f32 %v442_v11, %v275_v62 }
 0x11f   :  { %v380_v4 = vadd.f32 %v378_v22, %v374_v19  ;;  %v379_v35 = vadd.f32 %v377_v3, %v373_v23  ;;  %v401_v54 = vadd.f32 %v399_v6, %v395_v2  ;;  %v424_v48 = vadd.f32 %v422_v27, %v418_v32 }
 0x120   :  { %v362_v18 = vmul.f32 %v360_v8, %v1397_v1  ;;  %v366_v26 = vmul.f32 %v360_v8, %v1360_v33  ;;  %v365_v0 = vmul.f32 %v360_v8, %v1363_v36  ;;  %v384_v28 = vmul.f32 %v382_v51, %v323_v12 }
 0x121   :  { %v383_v29 = vmul.f32 %v382_v51, %v322_v14  ;;  %v400_v1 = vmul.f32 %v398_v52, %v276_v5  ;;  %v406_v13 = vmul.f32 %v404_v55, %v323_v12  ;;  %v405_v38 = vmul.f32 %v404_v55, %v322_v14 }
 0x122   :  { %v364_v25 = vsub.f32 %v363_v59, %v362_v18  ;;  %v417_v33 = vmul.f32 %v416_v45, %v1466_v15  ;;  %v421_v36 = vmul.f32 %v420_v56, %v275_v62  ;;  %v386_v40 = vadd.f32 %v384_v28, %v380_v4 }
 0x123   :  { %v385_v41 = vadd.f32 %v383_v29, %v379_v35  ;;  %v402_v42 = vadd.f32 %v400_v1, %v396_v24  ;;  %v407_v50 = vadd.f32 %v405_v38, %v401_v54  ;;  %v428_v34 = vmul.f32 %v426_v63, %v323_v12 }
 0x124   :  { %v368_v30 = vadd.f32 %v366_v26, %v364_v25  ;;  %v367_v31 = vadd.f32 %v365_v0, %v364_v25  ;;  %v423_v53 = vadd.f32 %v421_v36, %v417_v33  ;;  %v427_v51 = vmul.f32 %v426_v63, %v322_v14 }
 0x125   :  { %v408_v47 = vadd.f32 %v406_v13, %v402_v42  ;;  %v444_v56 = vmul.f32 %v442_v11, %v276_v5  ;;  %v440_v63 = vmul.f32 %v438_v10, %v1463_v57  ;;  %v439_v5 = vmul.f32 %v438_v10, %v1466_v15 }
 0x126   :  { %v370_v7 = vmax.f32 %v368_v30, 0.0  ;;  %v369_v39 = vmax.f32 %v367_v31, 0.0  ;;  %v450_v62 = vmul.f32 %v448_v20, %v323_v12  ;;  %v449_v11 = vmul.f32 %v448_v20, %v322_v14 }
 0x127   :  { %v446_v18 = vadd.f32 %v444_v56, %v440_v63  ;;  %v445_v22 = vadd.f32 %v443_v58, %v439_v5 }
 0x128   :  { %v390_v43 = vmul.f32 %v388_v9, %v370_v7  ;;  %v389_v44 = vmul.f32 %v388_v9, %v369_v39  ;;  %v412_v37 = vmul.f32 %v410_v16, %v370_v7  ;;  %v411_v46 = vmul.f32 %v410_v16, %v369_v39 }
 0x129   :  { %v434_v45 = vmul.f32 %v432_v17, %v370_v7  ;;  %v433_v55 = vmul.f32 %v432_v17, %v369_v39  ;;  %v430_v9 = vadd.f32 %v428_v34, %v424_v48  ;;  %v429_v16 = vadd.f32 %v427_v51, %v423_v53 }
 0x12a   :  { %v1485_v49 = vadd.f32 %v390_v43, %v386_v40  ;;  %v1487_v52 = vadd.f32 %v389_v44, %v385_v41  ;;  %v1493_v61 = vadd.f32 %v412_v37, %v408_v47  ;;  %v1495_v8 = vadd.f32 %v411_v46, %v407_v50 }
 0x12b   :  { %v1499_v17 = vadd.f32 %v434_v45, %v430_v9  ;;  %v456_v19 = vmul.f32 %v454_v21, %v370_v7  ;;  %v1507_v24 = vadd.f32 %v433_v55, %v429_v16  ;;  %v455_v57 = vmul.f32 %v454_v21, %v369_v39 }
 0x12c   :  { %v462_v59 = vsel %vm182_vm0, %v1485_v49, 0.0  ;;  %v459_v60 = vsel %vm182_vm0, %v1487_v52, 0.0  ;;  %v509_v23 = vsel %vm182_vm0, %v1493_v61, 0.0  ;;  %v506_v3 = vsel %vm182_vm0, %v1495_v8, 0.0 }
 0x12d   :  { %463 = vadd.xlane.f32.xlu1 %v462_v59  ;;  %460 = vadd.xlane.f32.xlu0 %v459_v60  ;;  %v452_v15 = vadd.f32 %v450_v62, %v446_v18  ;;  %v451_v10 = vadd.f32 %v449_v11, %v445_v22  ;;  %v556_v12 = vsel %vm182_vm0, %v1499_v17, 0.0  ;;  %v553_v14 = vsel %vm182_vm0, %v1507_v24, 0.0 }
 0x12e   :  { %v473_v0 = vmul.f32 %v1485_v49, %v1485_v49  ;;  %v472_v2 = vmul.f32 %v1487_v52, %v1487_v52  ;;  %v520_v1 = vmul.f32 %v1493_v61, %v1493_v61  ;;  %v519_v6 = vmul.f32 %v1495_v8, %v1495_v8 }
 0x12f   :  { %v1515_v20 = vadd.f32 %v456_v19, %v452_v15  ;;  %v1517_v25 = vadd.f32 %v455_v57, %v451_v10  ;;  %v567_v32 = vmul.f32 %v1499_v17, %v1499_v17  ;;  %v566_v27 = vmul.f32 %v1507_v24, %v1507_v24 }
 0x130   :  { %v477_v28 = vsel %vm182_vm0, %v473_v0, 0.0  ;;  %v474_v29 = vsel %vm182_vm0, %v472_v2, 0.0  ;;  %v524_v30 = vsel %vm182_vm0, %v520_v1, 0.0  ;;  %v521_v31 = vsel %vm182_vm0, %v519_v6, 0.0 }
 0x131   :  { %510 = vadd.xlane.f32.xlu1 %v509_v23  ;;  %507 = vadd.xlane.f32.xlu0 %v506_v3  ;;  %v603_v26 = vsel %vm182_vm0, %v1515_v20, 0.0  ;;  %v600_v21 = vsel %vm182_vm0, %v1517_v25, 0.0  ;;  %v571_v4 = vsel %vm182_vm0, %v567_v32, 0.0  ;;  %v568_v35 = vsel %vm182_vm0, %v566_v27, 0.0 }
 0x132   :  { %v614_v13 = vmul.f32 %v1515_v20, %v1515_v20  ;;  %v613_v38 = vmul.f32 %v1517_v25, %v1517_v25 }
 0x134   :  { %v618_v7 = vsel %vm182_vm0, %v614_v13, 0.0  ;;  %v615_v39 = vsel %vm182_vm0, %v613_v38, 0.0 }
 0x135   :  { %557 = vadd.xlane.f32.xlu1 %v556_v12  ;;  %554 = vadd.xlane.f32.xlu0 %v553_v14 }
 0x139   :  { %604 = vadd.xlane.f32.xlu1 %v603_v26  ;;  %601 = vadd.xlane.f32.xlu0 %v600_v21 }
 0x13d   :  { %478 = vadd.xlane.f32.xlu1 %v477_v28  ;;  %475 = vadd.xlane.f32.xlu0 %v474_v29 }
 0x141   :  { %525 = vadd.xlane.f32.xlu1 %v524_v30  ;;  %522 = vadd.xlane.f32.xlu0 %v521_v31 }
 0x145   :  { %572 = vadd.xlane.f32.xlu1 %v571_v4  ;;  %569 = vadd.xlane.f32.xlu0 %v568_v35 }
 0x149   :  { %619 = vadd.xlane.f32.xlu1 %v618_v7  ;;  %616 = vadd.xlane.f32.xlu0 %v615_v39 }
 0x1b6   :  { %v464_v33 = vpop.xlane.xlu1 %463  ;;  %v461_v36 = vpop.xlane.xlu0 %460 }
 0x1b7   :  { %v465_v40 = vadd.f32 %v464_v33, %v461_v36 }
 0x1b9   :  { %v466_v41 = vrot.slane %v465_v40, 4 }
 0x1ba   :  { %v511_v42 = vpop.xlane.xlu1 %510  ;;  %v508_v54 = vpop.xlane.xlu0 %507 }
 0x1bb   :  { %v512_v43 = vadd.f32 %v511_v42, %v508_v54  ;;  %v467_v37 = vadd.f32 %v466_v41, %v465_v40 }
 0x1bd   :  { %v513_v44 = vrot.slane %v512_v43, 4  ;;  %v468_v53 = vrot.slane %v467_v37, 2 }
 0x1be   :  { %v558_v46 = vpop.xlane.xlu1 %557  ;;  %v555_v47 = vpop.xlane.xlu0 %554 }
 0x1bf   :  { %v559_v50 = vadd.f32 %v558_v46, %v555_v47  ;;  %v514_v48 = vadd.f32 %v513_v44, %v512_v43  ;;  %v469_v60 = vadd.f32 %v468_v53, %v467_v37 }
 0x1c1   :  { %v560_v34 = vrot.slane %v559_v50, 4  ;;  %v515_v56 = vrot.slane %v514_v48, 2  ;;  %v470_v18 = vrot.slane %v469_v60, 1 }
 0x1c2   :  { %v605_v51 = vpop.xlane.xlu1 %604  ;;  %v602_v45 = vpop.xlane.xlu0 %601 }
 0x1c3   :  { %v606_v55 = vadd.f32 %v605_v51, %v602_v45  ;;  %v561_v58 = vadd.f32 %v560_v34, %v559_v50  ;;  %v516_v5 = vadd.f32 %v515_v56, %v514_v48  ;;  %v471_v26 = vadd.f32 %v470_v18, %v469_v60 }
 0x1c5   :  { %v607_v59 = vrot.slane %v606_v55, 4  ;;  %v562_v16 = vrot.slane %v561_v58, 2  ;;  %v517_v57 = vrot.slane %v516_v5, 1  ;;  %v1547_v4 = vmul.f32 0.00390625, %v471_v26 }
 0x1c6   :  { %v479_v9 = vpop.xlane.xlu1 %478  ;;  %v476_v63 = vpop.xlane.xlu0 %475 }
 0x1c7   :  { %v480_v62 = vadd.f32 %v479_v9, %v476_v63  ;;  %v608_v11 = vadd.f32 %v607_v59, %v606_v55  ;;  %v563_v15 = vadd.f32 %v562_v16, %v561_v58  ;;  %v518_v1 = vadd.f32 %v517_v57, %v516_v5 }
 0x1c8   :  { %v489_v37 = vmul.f32 %v1547_v4, %v1547_v4 }
 0x1c9   :  { %v481_v19 = vrot.slane %v480_v62, 4  ;;  %v609_v12 = vrot.slane %v608_v11, 2  ;;  %v564_v6 = vrot.slane %v563_v15, 1  ;;  %v1549_v36 = vmul.f32 0.00390625, %v518_v1 }
 0x1ca   :  { %v526_v22 = vpop.xlane.xlu1 %525  ;;  %v523_v23 = vpop.xlane.xlu0 %522  ;;  %v588_v1 = vstv %s1565_s7  ;;  %s1743_s7 = sld [smem:[#allocation10 + $0x1]] }
 0x1cb   :  { %v527_v3 = vadd.f32 %v526_v22, %v523_v23  ;;  %v482_v10 = vadd.f32 %v481_v19, %v480_v62  ;;  %v610_v31 = vadd.f32 %v609_v12, %v608_v11  ;;  %v565_v40 = vadd.f32 %v564_v6, %v563_v15 }
 0x1cc   :  { %v536_v34 = vmul.f32 %v1549_v36, %v1549_v36  ;;  %v494_v12 = vstv %s1553_s28  ;;  %v592_v6 = vstv %s1567_s8  ;;  %s1038_s28 = sld [smem:[#allocation9 + $0x9]] }
 0x1cd   :  { %v528_v14 = vrot.slane %v527_v3, 4  ;;  %v483_v21 = vrot.slane %v482_v10, 2  ;;  %v611_v42 = vrot.slane %v610_v31, 1  ;;  %v1559_v53 = vmul.f32 0.00390625, %v565_v40  ;;  %s1747_s8 = sld [smem:[#allocation9 + $0xb]] }
 0x1ce   :  { %v573_v0 = vpop.xlane.xlu1 %572  ;;  %v570_v2 = vpop.xlane.xlu0 %569  ;;  %v674_v40 = vstv %s1585_s3 }
 0x1cf   :  { %v529_v28 = vadd.f32 %v528_v14, %v527_v3  ;;  %v574_v29 = vadd.f32 %v573_v0, %v570_v2  ;;  %v484_v30 = vadd.f32 %v483_v21, %v482_v10  ;;  %v612_v45 = vadd.f32 %v611_v42, %v610_v31 }
 0x1d0   :  { %v583_v5 = vmul.f32 %v1559_v53, %v1559_v53  ;;  %v541_v21 = vstv %s1555_s29  ;;  %v498_v0 = vstv %s1561_s30  ;;  %v545_v2 = vstv %s1563_s6  ;;  %s1737_s29 = sld [smem:[#allocation10]] }
 0x1d1   :  { %v530_v32 = vrot.slane %v529_v28, 2  ;;  %v575_v27 = vrot.slane %v574_v29, 4  ;;  %v485_v35 = vrot.slane %v484_v30, 1  ;;  %v1573_v16 = vmul.f32 0.00390625, %v612_v45  ;;  %s1739_s30 = sld [smem:[#allocation7 + $0xb]] }
 0x1d2   :  { %v620_v13 = vpop.xlane.xlu1 %619  ;;  %v617_v38 = vpop.xlane.xlu0 %616  ;;  %s1741_s6 = sld [smem:[#allocation9 + $0xa]] }
 0x1d3   :  { %v531_v7 = vadd.f32 %v530_v32, %v529_v28  ;;  %v576_v39 = vadd.f32 %v575_v27, %v574_v29  ;;  %v621_v33 = vadd.f32 %v620_v13, %v617_v38  ;;  %v486_v41 = vadd.f32 %v485_v35, %v484_v30 }
 0x1d4   :  { %v630_v23 = vmul.f32 %v1573_v16, %v1573_v16  ;;  %v648_v30 = vstv %s1571_s9  ;;  %v635_v32 = vstv %s1575_s10  ;;  %v639_v27 = vstv %s1579_s0  ;;  %s1750_s9 = sld [smem:[#allocation10 + $0x2]] }
 0x1d5   :  { %v532_v54 = vrot.slane %v531_v7, 1  ;;  %v577_v43 = vrot.slane %v576_v39, 2  ;;  %v622_v44 = vrot.slane %v621_v33, 4  ;;  %v488_v46 = vmul.f32 0.00390625, %v486_v41  ;;  %s1760_s10 = sld [smem:[#allocation10 + $0x3]] }
 0x1d6   :  { %v670_v35 = vstv %s1577_s11  ;;  %v692_v41 = vstv %s1587_s12  ;;  %s1183_s11 = smov [#allocation12]  }
 0x1d7   :  { %v533_v47 = vadd.f32 %v532_v54, %v531_v7  ;;  %v578_v50 = vadd.f32 %v577_v43, %v576_v39  ;;  %v623_v48 = vadd.f32 %v622_v44, %v621_v33  ;;  %v490_v51 = vsub.f32 %v488_v46, %v489_v37  ;;  %s959_s0 = sshll.u32 %s1183_s11, 4  ;;  %s960_s0 = int_to_ptr.vmem [resolvable:$true] %s959_s0 }
 0x1d8   :  { %v652_v7 = vstv %s1583_s1  ;;  %v658_v33 = vstv %s1589_s13  ;;  %v664_v43 = vstv %s1591_s14  ;;  %v680_v37 = vstv %s1593_s15  ;;  %s1146_s1 = scalar_lea.vmem %s960_s0, 1024  ;;  %p1151_p12 = scmp.lt.s32.totalorder %s960_s0, %s960_s0 }
 0x1d9   :  { %v535_v55 = vmul.f32 0.00390625, %v533_v47  ;;  %v579_v56 = vrot.slane %v578_v50, 1  ;;  %v624_v58 = vrot.slane %v623_v48, 2  ;;  %v492_v59 = vadd.f32 1e-05, %v490_v51  ;;  %p1147_p11 = scmp.ne.s32.totalorder %s960_s0, %s1146_s1  ;;  %p1152_p13 = scmp.lt.s32.totalorder %s1146_s1, %s1146_s1 }
 0x1db   :  { %v537_v60 = vsub.f32 %v535_v55, %v536_v34  ;;  %v580_v9 = vadd.f32 %v579_v56, %v578_v50  ;;  %v625_v63 = vadd.f32 %v624_v58, %v623_v48  ;;  %1062 = vrsqrt.f32 %v492_v59  ;;  %p1153_p0 = por %p1152_p13, %p1151_p12 }
 0x1dc   :  { %v686_v48 = vstv %s1598_s16  ;;  %v696_v34 = vstv %s1596_s4  ;;  %v702_v56 = vstv %s1600_s17 }
 0x1dd   :  { %v539_v62 = vadd.f32 1e-05, %v537_v60  ;;  %v582_v11 = vmul.f32 0.00390625, %v580_v9  ;;  %v626_v18 = vrot.slane %v625_v63, 1  ;;  %v708_v60 = vstv %s1603_s18  ;;  %p1154_p1 = pnand %p1153_p0, %p1147_p11 }
 0x1de   :  { %v718_v9 = vstv %s1613_s20 }
 0x1df   :  { %1064 = vrsqrt.f32 %v539_v62  ;;  %v584_v19 = vsub.f32 %v582_v11, %v583_v5  ;;  %v627_v22 = vadd.f32 %v626_v18, %v625_v63 }
 0x1e1   :  { %v586_v3 = vadd.f32 1e-05, %v584_v19  ;;  %v629_v57 = vmul.f32 0.00390625, %v627_v22 }
 0x1e3   :  { %1066 = vrsqrt.f32 %v586_v3  ;;  %v631_v15 = vsub.f32 %v629_v57, %v630_v23 }
 0x1e5   :  { %v633_v10 = vadd.f32 1e-05, %v631_v15 }
 0x1e7   :  { %1068 = vrsqrt.f32 %v633_v10 }
 0x1e8   :  { %v1063_v14 = vpop.eup %1062 }
 0x1e9   :  { %v495_v26 = vmul.f32 %v1063_v14, %v494_v12 }
 0x1eb   :  { %v497_v29 = vmul.f32 %v495_v26, %v1547_v4  ;;  %v501_v38 = vmul.f32 %v495_v26, %v1485_v49  ;;  %v500_v39 = vmul.f32 %v495_v26, %v1487_v52 }
 0x1ec   :  { %v1065_v28 = vpop.eup %1064 }
 0x1ed   :  { %v542_v31 = vmul.f32 %v1065_v28, %v541_v21  ;;  %v499_v13 = vsub.f32 %v498_v0, %v497_v29 }
 0x1ef   :  { %v544_v4 = vmul.f32 %v542_v31, %v1549_v36  ;;  %v503_v54 = vadd.f32 %v501_v38, %v499_v13  ;;  %v502_v44 = vadd.f32 %v500_v39, %v499_v13  ;;  %v548_v52 = vmul.f32 %v542_v31, %v1493_v61 }
 0x1f0   :  { %v1067_v42 = vpop.eup %1066  ;;  %v547_v47 = vmul.f32 %v542_v31, %v1495_v8  ;;  %v714_v61 = vstv %s1607_s19 }
 0x1f1   :  { %v546_v49 = vsub.f32 %v545_v2, %v544_v4  ;;  %v589_v46 = vmul.f32 %v1067_v42, %v588_v1  ;;  %v1631_v36 = vmax.f32 %v503_v54, 0.0  ;;  %v1633_v50 = vmax.f32 %v502_v44, 0.0 }
 0x1f3   :  { %v550_v51 = vadd.f32 %v548_v52, %v546_v49  ;;  %v591_v45 = vmul.f32 %v589_v46, %v1559_v53  ;;  %v549_v55 = vadd.f32 %v547_v47, %v546_v49  ;;  %v595_v59 = vmul.f32 %v589_v46, %v1499_v17 }
 0x1f4   :  { %v1069_v58 = vpop.eup %1068  ;;  %v650_v11 = vmul.f32 %v648_v30, %v1631_v36  ;;  %v594_v18 = vmul.f32 %v589_v46, %v1507_v24  ;;  %v649_v19 = vmul.f32 %v648_v30, %v1633_v50  ;;  %v724_v53 = vstv %s1621_s21 }
 0x1f5   :  { %v552_v63 = vmax.f32 %v550_v51, 0.0  ;;  %v593_v8 = vsub.f32 %v592_v6, %v591_v45  ;;  %v636_v5 = vmul.f32 %v1069_v58, %v635_v32  ;;  %v1643_v62 = vmax.f32 %v549_v55, 0.0 }
 0x1f6   :  { %v672_v17 = vmul.f32 %v670_v35, %v1631_v36  ;;  %v671_v12 = vmul.f32 %v670_v35, %v1633_v50  ;;  %v693_v28 = vmul.f32 %v692_v41, %v1633_v50 }
 0x1f7   :  { %v597_v22 = vadd.f32 %v595_v59, %v593_v8  ;;  %v638_v23 = vmul.f32 %v636_v5, %v1573_v16  ;;  %v654_v3 = vmul.f32 %v652_v7, %v552_v63  ;;  %v642_v57 = vmul.f32 %v636_v5, %v1515_v20 }
 0x1f8   :  { %v596_v15 = vadd.f32 %v594_v18, %v593_v8  ;;  %v653_v10 = vmul.f32 %v652_v7, %v1643_v62  ;;  %v641_v24 = vmul.f32 %v636_v5, %v1517_v25  ;;  %v676_v21 = vmul.f32 %v674_v40, %v552_v63 }
 0x1f9   :  { %v599_v14 = vmax.f32 %v597_v22, 0.0  ;;  %v640_v26 = vsub.f32 %v639_v27, %v638_v23  ;;  %v675_v2 = vmul.f32 %v674_v40, %v1643_v62  ;;  %v694_v16 = vmul.f32 %v692_v41, %v1631_v36 }
 0x1fa   :  { %v598_v0 = vmax.f32 %v596_v15, 0.0  ;;  %v656_v1 = vadd.f32 %v654_v3, %v650_v11  ;;  %v655_v30 = vadd.f32 %v653_v10, %v649_v19  ;;  %v678_v13 = vadd.f32 %v676_v21, %v672_v17 }
 0x1fb   :  { %v644_v29 = vadd.f32 %v642_v57, %v640_v26  ;;  %v660_v20 = vmul.f32 %v658_v33, %v599_v14  ;;  %v643_v6 = vadd.f32 %v641_v24, %v640_v26  ;;  %v682_v32 = vmul.f32 %v680_v37, %v599_v14 }
 0x1fc   :  { %v659_v31 = vmul.f32 %v658_v33, %v598_v0  ;;  %v681_v35 = vmul.f32 %v680_v37, %v598_v0  ;;  %v698_v38 = vmul.f32 %v696_v34, %v552_v63  ;;  %v677_v4 = vadd.f32 %v675_v2, %v671_v12 }
 0x1fd   :  { %v646_v27 = vmax.f32 %v644_v29, 0.0  ;;  %v645_v25 = vmax.f32 %v643_v6, 0.0  ;;  %v662_v7 = vadd.f32 %v660_v20, %v656_v1  ;;  %v697_v40 = vmul.f32 %v696_v34, %v1643_v62 }
 0x1fe   :  { %v661_v39 = vadd.f32 %v659_v31, %v655_v30  ;;  %v684_v49 = vadd.f32 %v682_v32, %v678_v13  ;;  %v683_v33 = vadd.f32 %v681_v35, %v677_v4  ;;  %v704_v52 = vmul.f32 %v702_v56, %v599_v14 }
 0x1ff   :  { %v666_v41 = vmul.f32 %v664_v43, %v646_v27  ;;  %v665_v42 = vmul.f32 %v664_v43, %v645_v25  ;;  %v688_v54 = vmul.f32 %v686_v48, %v646_v27  ;;  %v687_v44 = vmul.f32 %v686_v48, %v645_v25 }
 0x200   :  { %v703_v37 = vmul.f32 %v702_v56, %v598_v0  ;;  %v700_v51 = vadd.f32 %v698_v38, %v694_v16  ;;  %v710_v45 = vmul.f32 %v708_v60, %v646_v27  ;;  %v699_v55 = vadd.f32 %v697_v40, %v693_v28 }
 0x201   :  { %v1661_v46 = vadd.f32 %v666_v41, %v662_v7  ;;  %v1663_v47 = vadd.f32 %v665_v42, %v661_v39  ;;  %v1665_v34 = vadd.f32 %v688_v54, %v684_v49  ;;  %v1667_v43 = vadd.f32 %v687_v44, %v683_v33 }
 0x202   :  { %v709_v48 = vmul.f32 %v708_v60, %v645_v25  ;;  %v720_v59 = vmul.f32 %v718_v9, %v552_v63  ;;  %v706_v8 = vadd.f32 %v704_v52, %v700_v51  ;;  %v705_v5 = vadd.f32 %v703_v37, %v699_v55 }
 0x203   :  { %v738_v58 = vsel %vm182_vm0, %v1661_v46, 0.0  ;;  %v735_v56 = vsel %vm182_vm0, %v1663_v47, 0.0  ;;  %v716_v11 = vmul.f32 %v714_v61, %v1631_v36  ;;  %v730_v18 = vstv %s1658_s22 }
 0x204   :  { %739 = vadd.xlane.f32.xlu1 %v738_v58  ;;  %736 = vadd.xlane.f32.xlu0 %v735_v56  ;;  %v726_v19 = vmul.f32 %v724_v53, %v599_v14  ;;  %v715_v60 = vmul.f32 %v714_v61, %v1633_v50  ;;  %v719_v22 = vmul.f32 %v718_v9, %v1643_v62  ;;  %v785_v3 = vsel %vm182_vm0, %v1665_v34, 0.0 }
 0x205   :  { %v725_v23 = vmul.f32 %v724_v53, %v598_v0  ;;  %v782_v63 = vsel %vm182_vm0, %v1667_v43, 0.0  ;;  %v1689_v17 = vadd.f32 %v710_v45, %v706_v8  ;;  %v1691_v57 = vadd.f32 %v709_v48, %v705_v5 }
 0x206   :  { %v722_v36 = vadd.f32 %v720_v59, %v716_v11  ;;  %v732_v15 = vmul.f32 %v730_v18, %v646_v27  ;;  %v721_v10 = vadd.f32 %v719_v22, %v715_v60  ;;  %v731_v12 = vmul.f32 %v730_v18, %v645_v25 }
 0x207   :  { %v832_v9 = vsel %vm182_vm0, %v1689_v17, 0.0  ;;  %v829_v62 = vsel %vm182_vm0, %v1691_v57, 0.0  ;;  %v749_v21 = vmul.f32 %v1661_v46, %v1661_v46  ;;  %v748_v0 = vmul.f32 %v1663_v47, %v1663_v47 }
 0x208   :  { %786 = vadd.xlane.f32.xlu1 %v785_v3  ;;  %783 = vadd.xlane.f32.xlu0 %v782_v63  ;;  %v728_v50 = vadd.f32 %v726_v19, %v722_v36  ;;  %v727_v61 = vadd.f32 %v725_v23, %v721_v10  ;;  %v796_v28 = vmul.f32 %v1665_v34, %v1665_v34 }
 0x209   :  { %v753_v2 = vsel %vm182_vm0, %v749_v21, 0.0  ;;  %v750_v16 = vsel %vm182_vm0, %v748_v0, 0.0  ;;  %v795_v29 = vmul.f32 %v1667_v43, %v1667_v43  ;;  %v843_v6 = vmul.f32 %v1689_v17, %v1689_v17 }
 0x20a   :  { %v1697_v53 = vadd.f32 %v732_v15, %v728_v50  ;;  %v1699_v14 = vadd.f32 %v731_v12, %v727_v61  ;;  %v800_v1 = vsel %vm182_vm0, %v796_v28, 0.0  ;;  %v842_v30 = vmul.f32 %v1691_v57, %v1691_v57 }
 0x20b   :  { %v797_v20 = vsel %vm182_vm0, %v795_v29, 0.0  ;;  %v847_v31 = vsel %vm182_vm0, %v843_v6, 0.0 }
 0x20c   :  { %833 = vadd.xlane.f32.xlu1 %v832_v9  ;;  %830 = vadd.xlane.f32.xlu0 %v829_v62  ;;  %v879_v26 = vsel %vm182_vm0, %v1697_v53, 0.0  ;;  %v876_v24 = vsel %vm182_vm0, %v1699_v14, 0.0  ;;  %v844_v32 = vsel %vm182_vm0, %v842_v30, 0.0  ;;  %v890_v35 = vmul.f32 %v1697_v53, %v1697_v53 }
 0x20d   :  { %v889_v27 = vmul.f32 %v1699_v14, %v1699_v14 }
 0x20e   :  { %v894_v25 = vsel %vm182_vm0, %v890_v35, 0.0 }
 0x20f   :  { %v891_v13 = vsel %vm182_vm0, %v889_v27, 0.0 }
 0x210   :  { %880 = vadd.xlane.f32.xlu1 %v879_v26  ;;  %877 = vadd.xlane.f32.xlu0 %v876_v24 }
 0x214   :  { %754 = vadd.xlane.f32.xlu1 %v753_v2  ;;  %751 = vadd.xlane.f32.xlu0 %v750_v16 }
 0x218   :  { %801 = vadd.xlane.f32.xlu1 %v800_v1  ;;  %798 = vadd.xlane.f32.xlu0 %v797_v20 }
 0x21c   :  { %848 = vadd.xlane.f32.xlu1 %v847_v31  ;;  %845 = vadd.xlane.f32.xlu0 %v844_v32 }
 0x220   :  { %895 = vadd.xlane.f32.xlu1 %v894_v25  ;;  %892 = vadd.xlane.f32.xlu0 %v891_v13 }
 0x28d   :  { %v740_v38 = vpop.xlane.xlu1 %739  ;;  %v737_v7 = vpop.xlane.xlu0 %736 }
 0x28e   :  { %v741_v39 = vadd.f32 %v740_v38, %v737_v7 }
 0x290   :  { %v742_v4 = vrot.slane %v741_v39, 4 }
 0x291   :  { %v787_v40 = vpop.xlane.xlu1 %786  ;;  %v784_v41 = vpop.xlane.xlu0 %783 }
 0x292   :  { %v788_v42 = vadd.f32 %v787_v40, %v784_v41  ;;  %v743_v44 = vadd.f32 %v742_v4, %v741_v39 }
 0x294   :  { %v789_v54 = vrot.slane %v788_v42, 4  ;;  %v744_v45 = vrot.slane %v743_v44, 2 }
 0x295   :  { %v834_v49 = vpop.xlane.xlu1 %833  ;;  %v831_v33 = vpop.xlane.xlu0 %830 }
 0x296   :  { %v835_v52 = vadd.f32 %v834_v49, %v831_v33  ;;  %v790_v37 = vadd.f32 %v789_v54, %v788_v42  ;;  %v745_v5 = vadd.f32 %v744_v45, %v743_v44 }
 0x298   :  { %v836_v51 = vrot.slane %v835_v52, 4  ;;  %v791_v56 = vrot.slane %v790_v37, 2  ;;  %v746_v3 = vrot.slane %v745_v5, 1 }
 0x299   :  { %v881_v55 = vpop.xlane.xlu1 %880  ;;  %v878_v48 = vpop.xlane.xlu0 %877 }
 0x29a   :  { %v882_v58 = vadd.f32 %v881_v55, %v878_v48  ;;  %v837_v59 = vadd.f32 %v836_v51, %v835_v52  ;;  %v792_v19 = vadd.f32 %v791_v56, %v790_v37  ;;  %v747_v26 = vadd.f32 %v746_v3, %v745_v5 }
 0x29c   :  { %v883_v8 = vrot.slane %v882_v58, 4  ;;  %v838_v60 = vrot.slane %v837_v59, 2  ;;  %v793_v12 = vrot.slane %v792_v19, 1  ;;  %v763_v31 = vmul.f32 0.00390625, %v747_v26 }
 0x29d   :  { %v755_v11 = vpop.xlane.xlu1 %754  ;;  %v752_v18 = vpop.xlane.xlu0 %751 }
 0x29e   :  { %v756_v22 = vadd.f32 %v755_v11, %v752_v18  ;;  %v884_v23 = vadd.f32 %v883_v8, %v882_v58  ;;  %v839_v50 = vadd.f32 %v838_v60, %v837_v59  ;;  %v794_v28 = vadd.f32 %v793_v12, %v792_v19 }
 0x29f   :  { %v765_v44 = vmul.f32 %v763_v31, %v763_v31 }
 0x2a0   :  { %v757_v63 = vrot.slane %v756_v22, 4  ;;  %v885_v9 = vrot.slane %v884_v23, 2  ;;  %v840_v29 = vrot.slane %v839_v50, 1  ;;  %v810_v7 = vmul.f32 0.00390625, %v794_v28 }
 0x2a1   :  { %v802_v36 = vpop.xlane.xlu1 %801  ;;  %v799_v15 = vpop.xlane.xlu0 %798  ;;  %v864_v28 = vstv %s1039_s27 }
 0x2a2   :  { %v803_v10 = vadd.f32 %v802_v36, %v799_v15  ;;  %v758_v61 = vadd.f32 %v757_v63, %v756_v22  ;;  %v886_v20 = vadd.f32 %v885_v9, %v884_v23  ;;  %v841_v39 = vadd.f32 %v840_v29, %v839_v50 }
 0x2a3   :  { %v812_v51 = vmul.f32 %v810_v7, %v810_v7  ;;  %v770_v9 = vstv %s1035_s23 }
 0x2a4   :  { %v804_v62 = vrot.slane %v803_v10, 4  ;;  %v759_v24 = vrot.slane %v758_v61, 2  ;;  %v887_v40 = vrot.slane %v886_v20, 1  ;;  %v1729_v45 = vmul.f32 0.00390625, %v841_v39 }
 0x2a5   :  { %v849_v21 = vpop.xlane.xlu1 %848  ;;  %v846_v0 = vpop.xlane.xlu0 %845  ;;  %v911_v39 = vstv %s1739_s30 }
 0x2a6   :  { %v805_v2 = vadd.f32 %v804_v62, %v803_v10  ;;  %v850_v16 = vadd.f32 %v849_v21, %v846_v0  ;;  %v760_v1 = vadd.f32 %v759_v24, %v758_v61  ;;  %v888_v48 = vadd.f32 %v887_v40, %v886_v20 }
 0x2a7   :  { %v859_v19 = vmul.f32 %v1729_v45, %v1729_v45  ;;  %v817_v24 = vstv %s1037_s24  ;;  %v774_v21 = vstv %s1036_s25  ;;  %v868_v40 = vstv %s1741_s6 }
 0x2a8   :  { %v806_v6 = vrot.slane %v805_v2, 2  ;;  %v851_v30 = vrot.slane %v850_v16, 4  ;;  %v761_v32 = vrot.slane %v760_v1, 1  ;;  %v1733_v60 = vmul.f32 0.00390625, %v888_v48 }
 0x2a9   :  { %v896_v35 = vpop.xlane.xlu1 %895  ;;  %v893_v27 = vpop.xlane.xlu0 %892  ;;  %v915_v48 = vstv %s1747_s8 }
 0x2aa   :  { %v807_v25 = vadd.f32 %v806_v6, %v805_v2  ;;  %v852_v13 = vadd.f32 %v851_v30, %v850_v16  ;;  %v897_v38 = vadd.f32 %v896_v35, %v893_v27  ;;  %v762_v4 = vadd.f32 %v761_v32, %v760_v1 }
 0x2ab   :  { %v906_v15 = vmul.f32 %v1733_v60, %v1733_v60  ;;  %v821_v6 = vstv %s1038_s28 }
 0x2ac   :  { %v808_v41 = vrot.slane %v807_v25, 1  ;;  %v853_v42 = vrot.slane %v852_v13, 2  ;;  %v898_v54 = vrot.slane %v897_v38, 4  ;;  %v764_v49 = vmul.f32 0.00390625, %v762_v4 }
 0x2ae   :  { %v809_v33 = vadd.f32 %v808_v41, %v807_v25  ;;  %v854_v52 = vadd.f32 %v853_v42, %v852_v13  ;;  %v899_v37 = vadd.f32 %v898_v54, %v897_v38  ;;  %v766_v55 = vsub.f32 %v764_v49, %v765_v44 }
 0x2af   :  { %v924_v25 = vstv %s1737_s29  ;;  %v932_v54 = vstv %s1743_s7 }
 0x2b0   :  { %v811_v58 = vmul.f32 0.00390625, %v809_v33  ;;  %v855_v56 = vrot.slane %v854_v52, 1  ;;  %v900_v59 = vrot.slane %v899_v37, 2  ;;  %v768_v8 = vadd.f32 1e-05, %v766_v55 }
 0x2b2   :  { %v813_v5 = vsub.f32 %v811_v58, %v812_v51  ;;  %v856_v11 = vadd.f32 %v855_v56, %v854_v52  ;;  %v901_v18 = vadd.f32 %v900_v59, %v899_v37  ;;  %1070 = vrsqrt.f32 %v768_v8 }
 0x2b4   :  { %v815_v22 = vadd.f32 1e-05, %v813_v5  ;;  %v858_v23 = vmul.f32 0.00390625, %v856_v11  ;;  %v902_v3 = vrot.slane %v901_v18, 1  ;;  %v941_v11 = vstv %s1750_s9 }
 0x2b6   :  { %1072 = vrsqrt.f32 %v815_v22  ;;  %v860_v63 = vsub.f32 %v858_v23, %v859_v19  ;;  %v903_v36 = vadd.f32 %v902_v3, %v901_v18 }
 0x2b8   :  { %v862_v10 = vadd.f32 1e-05, %v860_v63  ;;  %v905_v12 = vmul.f32 0.00390625, %v903_v36 }
 0x2ba   :  { %1074 = vrsqrt.f32 %v862_v10  ;;  %v907_v50 = vsub.f32 %v905_v12, %v906_v15 }
 0x2bc   :  { %v909_v61 = vadd.f32 1e-05, %v907_v50 }
 0x2be   :  { %1076 = vrsqrt.f32 %v909_v61 }
 0x2bf   :  { %v1071_v62 = vpop.eup %1070 }
 0x2c0   :  { %v771_v26 = vmul.f32 %v1071_v62, %v770_v9 }
 0x2c2   :  { %v773_v2 = vmul.f32 %v771_v26, %v763_v31  ;;  %v776_v1 = vmul.f32 %v771_v26, %v1663_v47  ;;  %v777_v20 = vmul.f32 %v771_v26, %v1661_v46 }
 0x2c3   :  { %v1073_v0 = vpop.eup %1072 }
 0x2c4   :  { %v818_v16 = vmul.f32 %v1073_v0, %v817_v24  ;;  %v775_v29 = vsub.f32 %v774_v21, %v773_v2 }
 0x2c6   :  { %v820_v30 = vmul.f32 %v818_v16, %v810_v7  ;;  %v778_v35 = vadd.f32 %v776_v1, %v775_v29  ;;  %v779_v27 = vadd.f32 %v777_v20, %v775_v29  ;;  %v823_v38 = vmul.f32 %v818_v16, %v1667_v43 }
 0x2c7   :  { %v1075_v32 = vpop.eup %1074  ;;  %v824_v47 = vmul.f32 %v818_v16, %v1665_v34 }
 0x2c8   :  { %v865_v31 = vmul.f32 %v1075_v32, %v864_v28  ;;  %v822_v13 = vsub.f32 %v821_v6, %v820_v30  ;;  %v780_v46 = vmax.f32 %v778_v35, 0.0  ;;  %v781_v4 = vmax.f32 %v779_v27, 0.0 }
 0x2ca   :  { %v825_v41 = vadd.f32 %v823_v38, %v822_v13  ;;  %v826_v7 = vadd.f32 %v824_v47, %v822_v13  ;;  %v867_v42 = vmul.f32 %v865_v31, %v1729_v45  ;;  %v870_v49 = vmul.f32 %v865_v31, %v1691_v57 }
 0x2cb   :  { %v1077_v44 = vpop.eup %1076  ;;  %v871_v33 = vmul.f32 %v865_v31, %v1689_v17  ;;  %v925_v52 = vmul.f32 %v924_v25, %v780_v46  ;;  %v926_v37 = vmul.f32 %v924_v25, %v781_v4 }
 0x2cc   :  { %v912_v34 = vmul.f32 %v1077_v44, %v911_v39  ;;  %v827_v43 = vmax.f32 %v825_v41, 0.0  ;;  %v828_v51 = vmax.f32 %v826_v7, 0.0  ;;  %v869_v55 = vsub.f32 %v868_v40, %v867_v42 }
 0x2cd   :  { %v927_v58 = vmax.f32 %v925_v52, 0.0  ;;  %v928_v56 = vmax.f32 %v926_v37, 0.0 }
 0x2ce   :  { %v872_v59 = vadd.f32 %v870_v49, %v869_v55  ;;  %v873_v45 = vadd.f32 %v871_v33, %v869_v55  ;;  %v914_v8 = vmul.f32 %v912_v34, %v1733_v60  ;;  %v917_v57 = vmul.f32 %v912_v34, %v1699_v14 }
 0x2cf   :  { %929 = vst.msk [vmem:[#allocation12] sm:$0xff] %vm182_vm0, %v927_v58  ;;  %930 = vst.msk [vmem:[#allocation12 + $0x8] sm:$0xff] %vm182_vm0, %v928_v56  ;;  %v933_v17 = vmul.f32 %v932_v54, %v827_v43  ;;  %v934_v5 = vmul.f32 %v932_v54, %v828_v51  ;;  %v918_v23 = vmul.f32 %v912_v34, %v1697_v53  ;;  %v948_v14 = vstv %s1760_s10 }
 0x2d0   :  { %v874_v18 = vmax.f32 %v872_v59, 0.0  ;;  %v875_v19 = vmax.f32 %v873_v45, 0.0  ;;  %v916_v22 = vsub.f32 %v915_v48, %v914_v8 }
 0x2d1   :  { %v935_v3 = vmax.f32 %v933_v17, 0.0  ;;  %v936_v63 = vmax.f32 %v934_v5, 0.0 }
 0x2d2   :  { %v919_v36 = vadd.f32 %v917_v57, %v916_v22  ;;  %v920_v15 = vadd.f32 %v918_v23, %v916_v22  ;;  %v942_v60 = vmul.f32 %v941_v11, %v874_v18  ;;  %v943_v10 = vmul.f32 %v941_v11, %v875_v19 }
 0x2d3   :  { %938 = vst.msk [vmem:[#allocation12 + $0x10] sm:$0xff] %vm182_vm0, %v935_v3  ;;  %939 = vst.msk [vmem:[#allocation12 + $0x18] sm:$0xff] %vm182_vm0, %v936_v63 }
 0x2d4   :  { %v921_v12 = vmax.f32 %v919_v36, 0.0  ;;  %v922_v50 = vmax.f32 %v920_v15, 0.0  ;;  %945 = vst.msk [vmem:[#allocation12 + $0x20] sm:$0xff] %vm182_vm0, %v942_v60  ;;  %946 = vst.msk [vmem:[#allocation12 + $0x28] sm:$0xff] %vm182_vm0, %v943_v10 }
 0x2d6   :  { %v949_v53 = vmul.f32 %v948_v14, %v921_v12  ;;  %v950_v61 = vmul.f32 %v948_v14, %v922_v50 }
 0x2d8   :  { %952 = vst.msk [vmem:[#allocation12 + $0x30] sm:$0xff] %vm182_vm0, %v949_v53  ;;  %953 = vst.msk [vmem:[#allocation12 + $0x38] sm:$0xff] %vm182_vm0, %v950_v61 }
 0x2d9   :  { %1157 = shalt.err (!%p1154_p1)
}
 0x2da   :  { %965 = dma.vmem_to_hbm [thread:$0]  %s960_s0, 1024, %s1787_s5, [#allocation4], %s1178_s2, %s1178_s2, %s1179_s26  }
 0x2db   :  { %1174 = dma.done.wait [#allocation4], 1024  }
 0x2dc   :  { %1175 = vsyncadd [#allocation4], 4294966272 }
 0x2dd   :  { %969 = vsyncpa [#allocation3], 1 }
 0x2de   :  { %970 = vsyncpa [#allocation4], 1 }
 0x2df   :  { %971 = vsyncpa [#allocation5], 1 }
 0x2e0   :  { %972 = vsyncpa [#allocation8], 1 }
 0x2e1   :  { %973 = vsyncpa [#allocation11], 1 }

</bundles_post_ra>
